<compile_context>
chip_gen: v5e
topology: v5e:2x2
jax: 0.10.0
libtpu: 0.0.40
codegen_flags: <defaults>
</compile_context>

<pallas_src>
import functools

import jax
import jax.numpy as jnp
from jax.experimental import pallas as pl
from jax.experimental.pallas import tpu as pltpu


# ---------------------------------------------------------------------------
# Pallas kernel: one whole conv3x3 + folded-BN bias + ELU (+ skip) layer for a
# single image, on the flat padded layout described above.
# ---------------------------------------------------------------------------
def _conv3x3_kernel(*refs, cin, row_stride, l_out, has_skip):
    """refs = (x, w, b[, skip], o)

    x_ref:    ((H+3)*(W+2), Cin)  bf16  flat zero-padded activation
    w_ref:    (9*Cin, Cout)       bf16  BN-scale-folded weights, tap-major rows
    b_ref:    (1, Cout)           f32   folded bias (conv bias + BN shift)
    skip_ref: (H*(W+2), Cout)     bf16  optional residual (junk cols are zero)
    o_ref:    (H*(W+2), Cout)     bf16
    """
    if has_skip:
        x_ref, w_ref, b_ref, skip_ref, o_ref = refs
    else:
        x_ref, w_ref, b_ref, o_ref = refs
        skip_ref = None

    acc = None
    for t in range(9):                          # statically unrolled 3x3 taps
        dy, dx = divmod(t, 3)
        start = dy * row_stride + dx            # flat offset of shifted window
        lhs = x_ref[start:start + l_out, :]               # (l_out, Cin) bf16
        rhs = w_ref[t * cin:(t + 1) * cin, :]              # (Cin, Cout) bf16
        part = jnp.dot(lhs, rhs, preferred_element_type=jnp.float32)
        acc = part if acc is None else acc + part

    y = acc + b_ref[...]                                   # (l_out, Cout) f32
    # ELU(alpha=1): x if x > 0 else exp(x) - 1 (exp argument clamped <= 0).
    y = jnp.where(y > 0, y, jnp.exp(jnp.minimum(y, 0.0)) - 1.0)
    if skip_ref is not None:                    # residual add AFTER the ELU
        y = y + skip_ref[...].astype(jnp.float32)
    o_ref[...] = y.astype(o_ref.dtype)


def conv3x3_bn_elu(x, w2d, bias, skip=None):
    """Fused conv3x3(pad=1) + BN(eval, folded) + ELU [+ residual add] layer.

    x:    (N, H, W, Cin)  bf16
    w2d:  (9*Cin, Cout)   bf16, BN scale folded, rows ordered (dy, dx, ci)
    bias: (Cout,)         f32
    skip: (N, H, W, Cout) bf16 or None (added after the ELU)
    returns (N, H, W, Cout) bf16
    """
    n, h, w, cin = x.shape
    cout = w2d.shape[-1]
    wp = w + 2                 # padded row stride (1 zero col left + 1 right)
    l_out = h * wp             # flat rows computed per image (incl. junk cols)
    l_pad = (h + 3) * wp       # 1 top + 2 bottom pad rows (2nd absorbs overrun)

    # Zero-pad and flatten; the reshape is free (contiguous, channel dim kept).
    xflat = jnp.pad(x, ((0, 0), (1, 2), (1, 1), (0, 0))).reshape(n, l_pad, cin)

    in_specs = [
        pl.BlockSpec((None, l_pad, cin), lambda i: (i, 0, 0)),   # per-image act
        pl.BlockSpec((9 * cin, cout), lambda i: (0, 0)),         # resident weights
        pl.BlockSpec((1, cout), lambda i: (0, 0)),               # bias
    ]
    args = [xflat, w2d, bias.reshape(1, cout)]
    if skip is not None:
        skipflat = jnp.pad(skip, ((0, 0), (0, 0), (0, 2), (0, 0))).reshape(
            n, l_out, cout)
        in_specs.append(pl.BlockSpec((None, l_out, cout), lambda i: (i, 0, 0)))
        args.append(skipflat)

    kernel = functools.partial(_conv3x3_kernel, cin=cin, row_stride=wp,
                               l_out=l_out, has_skip=skip is not None)
    out_flat = pl.pallas_call(
        kernel,
        out_shape=jax.ShapeDtypeStruct((n, l_out, cout), jnp.bfloat16),
        grid_spec=pltpu.PrefetchScalarGridSpec(
            num_scalar_prefetch=0,
            grid=(n,),                                   # one step per image
            in_specs=in_specs,
            out_specs=pl.BlockSpec((None, l_out, cout), lambda i: (i, 0, 0)),
        ),
        compiler_params=pltpu.CompilerParams(
            dimension_semantics=("parallel",),           # v7x: 1 image per TC
            vmem_limit_bytes=32 << 20,                   # actual <= ~12 MiB;
        ),                                               # safe on v5e/v6e/v7x
    )(*args)
    # Drop the two junk columns per row (pad positions) and restore NHWC.
    return out_flat.reshape(n, h, wp, cout)[:, :, :w, :]


# ---------------------------------------------------------------------------
# Plain-JAX glue pieces.
# ---------------------------------------------------------------------------
def conv_block_jax(x, w2d, bias):
    """conv3x3+BN(folded)+ELU in plain JAX (used only for conv1: Cin=1, K=9)."""
    n, h, w, cin = x.shape
    cout = w2d.shape[-1]
    xp = jnp.pad(x.astype(jnp.float32), ((0, 0), (1, 1), (1, 1), (0, 0)))
    patches = jnp.concatenate(
        [xp[:, dy:dy + h, dx:dx + w, :] for dy in range(3) for dx in range(3)],
        axis=-1)                                         # (N, H, W, 9*Cin)
    y = patches.reshape(n * h * w, 9 * cin) @ w2d.astype(jnp.float32) + bias
    y = jnp.where(y > 0, y, jnp.exp(jnp.minimum(y, 0.0)) - 1.0)
    return y.reshape(n, h, w, cout).astype(jnp.bfloat16)


def max_pool2(x):
    n, h, w, c = x.shape
    return jnp.max(x.reshape(n, h // 2, 2, w // 2, 2, c), axis=(2, 4))


# ---------------------------------------------------------------------------
# Parameters (BN eval stats folded into conv weights / bias at build time).
# ---------------------------------------------------------------------------
def init_conv_block(key, cin, cout):
    k1, k2, k3, k4, k5, k6 = jax.random.split(key, 6)
    wgt = jax.random.normal(k1, (3, 3, cin, cout), jnp.float32) / (3.0 * (cin ** 0.5))
    b_conv = 0.01 * jax.random.normal(k2, (cout,), jnp.float32)
    gamma = 1.0 + 0.1 * jax.random.normal(k3, (cout,), jnp.float32)
    beta = 0.1 * jax.random.normal(k4, (cout,), jnp.float32)
    r_mean = 0.1 * jax.random.normal(k5, (cout,), jnp.float32)
    r_var = 1.0 + 0.1 * jax.random.uniform(k6, (cout,), jnp.float32)
    eps = 1e-5
    scale = gamma / jnp.sqrt(r_var + eps)
    # Fold BN scale into the conv weights and (conv bias + BN shift) into bias;
    # cast weights to bf16 for the MXU.  Kernel epilogue is just bias + ELU.
    w2d = (wgt * scale).reshape(9 * cin, cout).astype(jnp.bfloat16)
    bias = beta + (b_conv - r_mean) * scale
    return (w2d, bias)


def init_resnet_params(key, in_channels, num_classes):
    keys = jax.random.split(key, 14)
    p = {}
    p["conv1"] = init_conv_block(keys[0], in_channels, 128)
    p["conv2"] = init_conv_block(keys[1], 128, 128)
    p["res1a"] = init_conv_block(keys[2], 128, 128)
    p["res1b"] = init_conv_block(keys[3], 128, 128)
    p["conv3"] = init_conv_block(keys[4], 128, 256)
    p["conv4"] = init_conv_block(keys[5], 256, 256)
    p["res2a"] = init_conv_block(keys[6], 256, 256)
    p["res2b"] = init_conv_block(keys[7], 256, 256)
    p["conv5"] = init_conv_block(keys[8], 256, 512)
    p["conv6"] = init_conv_block(keys[9], 512, 512)
    p["res3a"] = init_conv_block(keys[10], 512, 512)
    p["res3b"] = init_conv_block(keys[11], 512, 512)
    w_lin = jax.random.normal(keys[12], (512, num_classes), jnp.float32) / (512.0 ** 0.5)
    b_lin = 0.01 * jax.random.normal(keys[13], (num_classes,), jnp.float32)
    p["classifier"] = (w_lin, b_lin)
    return p


# ---------------------------------------------------------------------------
# Forward pass (matches the PyTorch ResNet in eval mode).
# ---------------------------------------------------------------------------
def resnet_forward(params, x_nchw):
    x = jnp.transpose(x_nchw, (0, 2, 3, 1)).astype(jnp.bfloat16)  # NCHW -> NHWC
    out = conv_block_jax(x, *params["conv1"])            # conv1 (Cin=1): JAX glue
    out = max_pool2(conv3x3_bn_elu(out, *params["conv2"]))
    r = conv3x3_bn_elu(out, *params["res1a"])
    out = conv3x3_bn_elu(r, *params["res1b"], skip=out)  # res1(out) + out, fused
    # drop1: nn.Dropout(0.5) in eval mode == identity
    out = conv3x3_bn_elu(out, *params["conv3"])
    out = max_pool2(conv3x3_bn_elu(out, *params["conv4"]))
    r = conv3x3_bn_elu(out, *params["res2a"])
    out = conv3x3_bn_elu(r, *params["res2b"], skip=out)  # res2(out) + out, fused
    # drop2: identity
    out = conv3x3_bn_elu(out, *params["conv5"])
    out = max_pool2(conv3x3_bn_elu(out, *params["conv6"]))
    r = conv3x3_bn_elu(out, *params["res3a"])
    out = conv3x3_bn_elu(r, *params["res3b"], skip=out)  # res3(out) + out, fused
    # drop3: identity
    # classifier: MaxPool2d(6) on the 6x6 map -> Flatten -> Linear(512, classes)
    feat = jnp.max(out, axis=(1, 2)).astype(jnp.float32)          # (N, 512)
    w_lin, b_lin = params["classifier"]
    return jnp.dot(feat, w_lin) + b_lin


if __name__ == "__main__":
    key = jax.random.PRNGKey(0)
    k_param, k_x, k_chk_w, k_chk_x = jax.random.split(key, 4)
    in_channels, num_classes = 1, 7
    batch, spatial = 2, 48          # 48 -> 24 -> 12 -> 6 -> MaxPool2d(6) -> 1x1
    params = init_resnet_params(k_param, in_channels, num_classes)
    x = jax.random.normal(k_x, (batch, in_channels, spatial, spatial), jnp.float32)

    # Self-check: the flat-layout Pallas conv block vs a plain-JAX reference.
    chk_w, chk_b = init_conv_block(k_chk_w, 128, 128)
    chk_x = (0.5 * jax.random.normal(k_chk_x, (2, 12, 12, 128), jnp.float32)
             ).astype(jnp.bfloat16)
    got = conv3x3_bn_elu(chk_x, chk_w, chk_b).astype(jnp.float32)
    want = conv_block_jax(chk_x, chk_w, chk_b).astype(jnp.float32)
    assert bool(jnp.allclose(got, want, atol=0.1, rtol=0.1)), "conv kernel mismatch"

    logits = jax.jit(resnet_forward)(params, x)
    jax.block_until_ready(logits)
    assert logits.shape == (batch, num_classes)
    assert bool(jnp.all(jnp.isfinite(logits)))
    print("KERNEL_OK")
</pallas_src>

<mosaic_0001>
module attributes {stable_mosaic.version = 11 : i64} {
  func.func @_conv3x3_kernel(%arg0: i32, %arg1: memref<1x210x128xbf16, #tpu.memory_space<vmem>>, %arg2: memref<1152x128xbf16, #tpu.memory_space<vmem>>, %arg3: memref<1x128xf32, #tpu.memory_space<vmem>>, %arg4: memref<1x168x128xbf16, #tpu.memory_space<vmem>>) attributes {dimension_semantics = [#tpu.dimension_semantics<parallel>], iteration_bounds = array<i64: 2>, scalar_prefetch = 0 : i64, scratch_operands = 0 : i64, tpu.core_type = #tpu.core_type<tc>, window_params = [{transform_indices = @transform_0, window_bounds = array<i64: 1, 210, 128>}, {pipeline_mode = #tpu.pipeline_mode<synchronous>, transform_indices = @transform_1, window_bounds = array<i64: 1152, 128>}, {pipeline_mode = #tpu.pipeline_mode<synchronous>, transform_indices = @transform_2, window_bounds = array<i64: 1, 128>}, {transform_indices = @transform_3, window_bounds = array<i64: 1, 168, 128>}]} {
    %c0 = arith.constant 0 : index
    %c0_0 = arith.constant 0 : index
    %c0_1 = arith.constant 0 : index
    %0 = vector.load %arg1[%c0, %c0_0, %c0_1] : memref<1x210x128xbf16, #tpu.memory_space<vmem>>, vector<1x168x128xbf16>
    %1 = vector.shape_cast %0 : vector<1x168x128xbf16> to vector<168x128xbf16>
    %c0_2 = arith.constant 0 : index
    %c0_3 = arith.constant 0 : index
    %2 = vector.load %arg2[%c0_2, %c0_3] : memref<1152x128xbf16, #tpu.memory_space<vmem>>, vector<128x128xbf16>
    %cst = arith.constant dense<0.000000e+00> : vector<168x128xf32>
    %3 = tpu.matmul %1, %2, %cst {dimension_numbers = #tpu.dot_dimension_numbers<[1], [0], [0], [1], [0, 0, 1, 1], [], []>} : vector<168x128xbf16>, vector<128x128xbf16>, vector<168x128xf32> -> vector<168x128xf32>
    %c0_4 = arith.constant 0 : index
    %c1 = arith.constant 1 : index
    %c0_5 = arith.constant 0 : index
    %4 = vector.load %arg1[%c0_4, %c1, %c0_5] : memref<1x210x128xbf16, #tpu.memory_space<vmem>>, vector<1x168x128xbf16>
    %5 = vector.shape_cast %4 : vector<1x168x128xbf16> to vector<168x128xbf16>
    %c128 = arith.constant 128 : index
    %c0_6 = arith.constant 0 : index
    %6 = vector.load %arg2[%c128, %c0_6] : memref<1152x128xbf16, #tpu.memory_space<vmem>>, vector<128x128xbf16>
    %cst_7 = arith.constant dense<0.000000e+00> : vector<168x128xf32>
    %7 = tpu.matmul %5, %6, %cst_7 {dimension_numbers = #tpu.dot_dimension_numbers<[1], [0], [0], [1], [0, 0, 1, 1], [], []>} : vector<168x128xbf16>, vector<128x128xbf16>, vector<168x128xf32> -> vector<168x128xf32>
    %8 = arith.addf %3, %7 : vector<168x128xf32>
    %c0_8 = arith.constant 0 : index
    %c2 = arith.constant 2 : index
    %c0_9 = arith.constant 0 : index
    %9 = vector.load %arg1[%c0_8, %c2, %c0_9] : memref<1x210x128xbf16, #tpu.memory_space<vmem>>, vector<1x168x128xbf16>
    %10 = vector.shape_cast %9 : vector<1x168x128xbf16> to vector<168x128xbf16>
    %c256 = arith.constant 256 : index
    %c0_10 = arith.constant 0 : index
    %11 = vector.load %arg2[%c256, %c0_10] : memref<1152x128xbf16, #tpu.memory_space<vmem>>, vector<128x128xbf16>
    %cst_11 = arith.constant dense<0.000000e+00> : vector<168x128xf32>
    %12 = tpu.matmul %10, %11, %cst_11 {dimension_numbers = #tpu.dot_dimension_numbers<[1], [0], [0], [1], [0, 0, 1, 1], [], []>} : vector<168x128xbf16>, vector<128x128xbf16>, vector<168x128xf32> -> vector<168x128xf32>
    %13 = arith.addf %8, %12 : vector<168x128xf32>
    %c0_12 = arith.constant 0 : index
    %c14 = arith.constant 14 : index
    %c0_13 = arith.constant 0 : index
    %14 = vector.load %arg1[%c0_12, %c14, %c0_13] : memref<1x210x128xbf16, #tpu.memory_space<vmem>>, vector<1x168x128xbf16>
    %15 = vector.shape_cast %14 : vector<1x168x128xbf16> to vector<168x128xbf16>
    %c384 = arith.constant 384 : index
    %c0_14 = arith.constant 0 : index
    %16 = vector.load %arg2[%c384, %c0_14] : memref<1152x128xbf16, #tpu.memory_space<vmem>>, vector<128x128xbf16>
    %cst_15 = arith.constant dense<0.000000e+00> : vector<168x128xf32>
    %17 = tpu.matmul %15, %16, %cst_15 {dimension_numbers = #tpu.dot_dimension_numbers<[1], [0], [0], [1], [0, 0, 1, 1], [], []>} : vector<168x128xbf16>, vector<128x128xbf16>, vector<168x128xf32> -> vector<168x128xf32>
    %18 = arith.addf %13, %17 : vector<168x128xf32>
    %c0_16 = arith.constant 0 : index
    %c15 = arith.constant 15 : index
    %c0_17 = arith.constant 0 : index
    %19 = vector.load %arg1[%c0_16, %c15, %c0_17] : memref<1x210x128xbf16, #tpu.memory_space<vmem>>, vector<1x168x128xbf16>
    %20 = vector.shape_cast %19 : vector<1x168x128xbf16> to vector<168x128xbf16>
    %c512 = arith.constant 512 : index
    %c0_18 = arith.constant 0 : index
    %21 = vector.load %arg2[%c512, %c0_18] : memref<1152x128xbf16, #tpu.memory_space<vmem>>, vector<128x128xbf16>
    %cst_19 = arith.constant dense<0.000000e+00> : vector<168x128xf32>
    %22 = tpu.matmul %20, %21, %cst_19 {dimension_numbers = #tpu.dot_dimension_numbers<[1], [0], [0], [1], [0, 0, 1, 1], [], []>} : vector<168x128xbf16>, vector<128x128xbf16>, vector<168x128xf32> -> vector<168x128xf32>
    %23 = arith.addf %18, %22 : vector<168x128xf32>
    %c0_20 = arith.constant 0 : index
    %c16 = arith.constant 16 : index
    %c0_21 = arith.constant 0 : index
    %24 = vector.load %arg1[%c0_20, %c16, %c0_21] : memref<1x210x128xbf16, #tpu.memory_space<vmem>>, vector<1x168x128xbf16>
    %25 = vector.shape_cast %24 : vector<1x168x128xbf16> to vector<168x128xbf16>
    %c640 = arith.constant 640 : index
    %c0_22 = arith.constant 0 : index
    %26 = vector.load %arg2[%c640, %c0_22] : memref<1152x128xbf16, #tpu.memory_space<vmem>>, vector<128x128xbf16>
    %cst_23 = arith.constant dense<0.000000e+00> : vector<168x128xf32>
    %27 = tpu.matmul %25, %26, %cst_23 {dimension_numbers = #tpu.dot_dimension_numbers<[1], [0], [0], [1], [0, 0, 1, 1], [], []>} : vector<168x128xbf16>, vector<128x128xbf16>, vector<168x128xf32> -> vector<168x128xf32>
    %28 = arith.addf %23, %27 : vector<168x128xf32>
    %c0_24 = arith.constant 0 : index
    %c28 = arith.constant 28 : index
    %c0_25 = arith.constant 0 : index
    %29 = vector.load %arg1[%c0_24, %c28, %c0_25] : memref<1x210x128xbf16, #tpu.memory_space<vmem>>, vector<1x168x128xbf16>
    %30 = vector.shape_cast %29 : vector<1x168x128xbf16> to vector<168x128xbf16>
    %c768 = arith.constant 768 : index
    %c0_26 = arith.constant 0 : index
    %31 = vector.load %arg2[%c768, %c0_26] : memref<1152x128xbf16, #tpu.memory_space<vmem>>, vector<128x128xbf16>
    %cst_27 = arith.constant dense<0.000000e+00> : vector<168x128xf32>
    %32 = tpu.matmul %30, %31, %cst_27 {dimension_numbers = #tpu.dot_dimension_numbers<[1], [0], [0], [1], [0, 0, 1, 1], [], []>} : vector<168x128xbf16>, vector<128x128xbf16>, vector<168x128xf32> -> vector<168x128xf32>
    %33 = arith.addf %28, %32 : vector<168x128xf32>
    %c0_28 = arith.constant 0 : index
    %c29 = arith.constant 29 : index
    %c0_29 = arith.constant 0 : index
    %34 = vector.load %arg1[%c0_28, %c29, %c0_29] : memref<1x210x128xbf16, #tpu.memory_space<vmem>>, vector<1x168x128xbf16>
    %35 = vector.shape_cast %34 : vector<1x168x128xbf16> to vector<168x128xbf16>
    %c896 = arith.constant 896 : index
    %c0_30 = arith.constant 0 : index
    %36 = vector.load %arg2[%c896, %c0_30] : memref<1152x128xbf16, #tpu.memory_space<vmem>>, vector<128x128xbf16>
    %cst_31 = arith.constant dense<0.000000e+00> : vector<168x128xf32>
    %37 = tpu.matmul %35, %36, %cst_31 {dimension_numbers = #tpu.dot_dimension_numbers<[1], [0], [0], [1], [0, 0, 1, 1], [], []>} : vector<168x128xbf16>, vector<128x128xbf16>, vector<168x128xf32> -> vector<168x128xf32>
    %38 = arith.addf %33, %37 : vector<168x128xf32>
    %c0_32 = arith.constant 0 : index
    %c30 = arith.constant 30 : index
    %c0_33 = arith.constant 0 : index
    %39 = vector.load %arg1[%c0_32, %c30, %c0_33] : memref<1x210x128xbf16, #tpu.memory_space<vmem>>, vector<1x168x128xbf16>
    %40 = vector.shape_cast %39 : vector<1x168x128xbf16> to vector<168x128xbf16>
    %c1024 = arith.constant 1024 : index
    %c0_34 = arith.constant 0 : index
    %41 = vector.load %arg2[%c1024, %c0_34] : memref<1152x128xbf16, #tpu.memory_space<vmem>>, vector<128x128xbf16>
    %cst_35 = arith.constant dense<0.000000e+00> : vector<168x128xf32>
    %42 = tpu.matmul %40, %41, %cst_35 {dimension_numbers = #tpu.dot_dimension_numbers<[1], [0], [0], [1], [0, 0, 1, 1], [], []>} : vector<168x128xbf16>, vector<128x128xbf16>, vector<168x128xf32> -> vector<168x128xf32>
    %43 = arith.addf %38, %42 : vector<168x128xf32>
    %c0_36 = arith.constant 0 : index
    %c0_37 = arith.constant 0 : index
    %44 = vector.load %arg3[%c0_36, %c0_37] : memref<1x128xf32, #tpu.memory_space<vmem>>, vector<1x128xf32>
    %45 = vector.broadcast %44 : vector<1x128xf32> to vector<168x128xf32>
    %46 = arith.addf %43, %45 : vector<168x128xf32>
    %cst_38 = arith.constant 0.000000e+00 : f32
    %47 = vector.broadcast %cst_38 : f32 to vector<168x128xf32>
    %48 = arith.cmpf ogt, %46, %47 : vector<168x128xf32>
    %cst_39 = arith.constant 0.000000e+00 : f32
    %49 = vector.broadcast %cst_39 : f32 to vector<168x128xf32>
    %50 = arith.minimumf %46, %49 : vector<168x128xf32>
    %51 = math.exp %50 : vector<168x128xf32>
    %cst_40 = arith.constant 1.000000e+00 : f32
    %52 = vector.broadcast %cst_40 : f32 to vector<168x128xf32>
    %53 = arith.subf %51, %52 : vector<168x128xf32>
    %54 = arith.select %48, %46, %53 : vector<168x128xi1>, vector<168x128xf32>
    %55 = arith.truncf %54 : vector<168x128xf32> to vector<168x128xbf16>
    %c0_41 = arith.constant 0 : index
    %c0_42 = arith.constant 0 : index
    %c0_43 = arith.constant 0 : index
    %56 = vector.load %arg4[%c0_41, %c0_42, %c0_43] : memref<1x168x128xbf16, #tpu.memory_space<vmem>>, vector<1x168x128xbf16>
    %57 = vector.shape_cast %56 : vector<1x168x128xbf16> to vector<168x128xbf16>
    %58 = vector.shape_cast %55 : vector<168x128xbf16> to vector<1x168x128xbf16>
    tpu.vector_store %arg4[%c0_41, %c0_42, %c0_43], %58 {strides = array<i32>} : memref<1x168x128xbf16, #tpu.memory_space<vmem>>, vector<1x168x128xbf16>,
    return
  }
  func.func @transform_0(%arg0: i32) -> (i32, i32, i32) {
    %c0_i32 = arith.constant 0 : i32
    %c0_i32_0 = arith.constant 0 : i32
    %c0_i32_1 = arith.constant 0 : i32
    return %arg0, %c0_i32, %c0_i32_0 : i32, i32, i32
  }
  func.func @transform_1(%arg0: i32) -> (i32, i32) {
    %c0_i32 = arith.constant 0 : i32
    %c0_i32_0 = arith.constant 0 : i32
    %c0_i32_1 = arith.constant 0 : i32
    return %c0_i32, %c0_i32_0 : i32, i32
  }
  func.func @transform_2(%arg0: i32) -> (i32, i32) {
    %c0_i32 = arith.constant 0 : i32
    %c0_i32_0 = arith.constant 0 : i32
    %c0_i32_1 = arith.constant 0 : i32
    return %c0_i32, %c0_i32_0 : i32, i32
  }
  func.func @transform_3(%arg0: i32) -> (i32, i32, i32) {
    %c0_i32 = arith.constant 0 : i32
    %c0_i32_0 = arith.constant 0 : i32
    %c0_i32_1 = arith.constant 0 : i32
    return %arg0, %c0_i32, %c0_i32_0 : i32, i32, i32
  }
}

</mosaic_0001>

<bundles_post_ra>
// kernel: tpu_custom_call.1
= control target key start
LH: loop header
LB: loop body
LE: loop exit
PB: predicated region body
PF: predicated region fallthrough
CT: control target
= control target key end

     0   :  { %8 = vsyncpa [#allocation3], 0  ;;  %s3954_s0 = inlined_call_operand.vmem [shape: bf16[2,210,128], index: 0, kind: input, shape index: {}]   ;;  %s3955_s1 = inlined_call_operand.hbm [shape: bf16[1152,128], index: 1, kind: input, shape index: {}]   ;;  %s3956_s2 = inlined_call_operand.vmem [shape: f32[1,128], index: 2, kind: input, shape index: {}]   ;;  %s3957_s3 = inlined_call_operand.hbm [shape: bf16[2,168,128], index: 3, kind: output, shape index: {}]  }
   0x1   :  { %9 = vsyncpa [#allocation4], 0 }
   0x2   :  { %11 = vsyncpa [#allocation4 + $0x1], 0  ;;  %s3402_s12 = smov 0   ;;  %s3404_s13 = smov 0  }
   0x3   :  { %s3406_s14 = smov 0   ;;  %s3408_s15 = smov 0  }
   0x4 LB: > { %s3423_s16 = sadd.s32 4294967295, %s3375_s15   ;;  %s2490_s17 = sadd.s32 4294967294, %s3375_s15   ;;  %s3375_s15 = sphi %s3408_s15, %s3963_s15   ;;  %s3371_s14 = sphi %s3406_s14, %s3962_s14   ;;  %s3367_s13 = sphi %s3404_s13, %s3961_s13   ;;  %s3363_s12 = sphi %s3402_s12, %s3960_s12  }
   0x5   : > { %s3427_s18 = sadd.s32 1, %s3375_s15   ;;  %s92_s19 = sadd.s32 1, %s3371_s14 }
   0x6   : > { %s89_s20 = ssub.s32 %s3375_s15, %s3427_s18  ;;  %p102_p0 = scmp.ne.s32.totalorder %s3371_s14, %s3367_s13 }
   0x7   : > { %p90_p1 = scmp.eq.s32.totalorder %s89_s20, 0  ;;  %p103_p2 = scmp.eq.s32.totalorder %s3423_s16, 1 }
   0x8   : > { %p108_p3 = scmp.ne.s32.totalorder %s3367_s13, %s3363_s12  ;;  %p109_p4 = scmp.eq.s32.totalorder %s2490_s17, 1 }
   0x9   : > { %s3438_s21 = scalar_select %p90_p1, %s3371_s14, %s92_s19  }
   0xa   : > { %p3440_p5 = por %p103_p2, %p102_p0  ;;  %p3444_p6 = por %p109_p4, %p108_p3 }
   0xb   : > { %p2491_p7 = scmp.ge.s32.totalorder %s3375_s15, 1  ;;  %p116_p8 = scmp.lt.s32.totalorder %s3375_s15, 3 }
   0xc   : > { %p3196_p9 = scmp.eq.s32.totalorder %s3423_s16, 0  ;;  %s127_s26 = sshll.u32 %s3955_s1, 4  ;;  %s128_s26 = int_to_ptr.hbm [resolvable:$true] %s127_s26 }
   0xd   : > { %p117_p10 = pnand %p2491_p7, %p116_p8  ;;  %s3377_s27 = smov [#allocation2]  }
   0xe   : > { %s129_s28 = sshll.u32 %s3377_s27, 4  ;;  %s3378_s29 = smov 64   ;;  %s130_s28 = int_to_ptr.vmem [resolvable:$true] %s129_s28 }
   0xf   : > { %p3188_p11 = pneg %p117_p10  ;;  %s3379_s30 = smov 4  }
  0x10   : > { %156 = sbr.rel (%p117_p10) target bundleno = 597 (0x255), region = 32 }
  0x11   : > { %p3189_p12 = pnand %p3196_p9, %p3188_p11 }
  0x13   : > { %3191 = dma.hbm_to_vmem [thread:$0]  (!%p3189_p12), %s128_s26, 9216, %s130_s28, [#allocation3], %s3378_s29, %s3378_s29, %s3379_s30  }
  0x15   : > { %3354 = dma.done.wait (%p3196_p9), [#allocation3], 9216  }
  0x16   : > { %3356 = vsyncadd (%p3196_p9), [#allocation3], 4294958080  ;;  %p181_p13 = scmp.lt.s32.totalorder %s3423_s16, 1  ;;  %v2905_v0 = vld [vmem:[#allocation2 + $0x78] sm:$0xff]  ;;  %v2904_v1 = vld [vmem:[#allocation2 + $0x70] sm:$0xff]  ;;  %vm648_vm1 = vcmask 1046528  }
  0x17   : > { %442 = vmatpush.bf16.msra.mxu0 %v2905_v0  ;;  %3136 = vmatpush.bf16.msra.mxu1 %v2905_v0  ;;  %v2903_v2 = vld [vmem:[#allocation2 + $0x68] sm:$0xff]  ;;  %v2902_v3 = vld [vmem:[#allocation2 + $0x60] sm:$0xff]  ;;  %v2901_v4 = vld [vmem:[#allocation2 + $0x58] sm:$0xff]  ;;  %vm295_vm0 = vsmask.f32 7424  ;;  %vm906_vm3 = vcmask 1044480  }
  0x18   : > { %3138 = vmatpush.bf16.msra.mxu3 %v2905_v0  ;;  %3137 = vmatpush.bf16.msra.mxu2 %v2905_v0  ;;  %s182_s4 = scalar_select %p181_p13, %s3423_s16, 1  ;;  %v2900_v10 = vld [vmem:[#allocation2 + $0x50] sm:$0xff]  ;;  %v2899_v20 = vld [vmem:[#allocation2 + $0x48] sm:$0xff]  ;;  %v2898_v31 = vld [vmem:[#allocation2 + $0x40] sm:$0xff]  ;;  %vm1091_vm2 = vsmask.f32 4352 }
  0x19   : > { %v2897_v38 = vld [vmem:[#allocation2 + $0x38] sm:$0xff]  ;;  %v2896_v48 = vld [vmem:[#allocation2 + $0x30] sm:$0xff]  ;;  %v2895_v57 = vld [vmem:[#allocation2 + $0x28] sm:$0xff]  ;;  %vm1596_vm4 = vcmask 1045504   ;;  %vm1781_vm5 = vsmask.f32 5376 }
  0x1a   : > { %s3180_s5 = smul.u32 108, %s182_s4  ;;  %v2921_v39 = vld [vmem:[#allocation2 + $0xf8] sm:$0xff]  ;;  %v2920_v52 = vld [vmem:[#allocation2 + $0xf0] sm:$0xff]  ;;  %v2919_v59 = vld [vmem:[#allocation2 + $0xe8] sm:$0xff]  ;;  %s178_s11 = sand.u32 1, %s3367_s13  }
  0x1b   : > { %443 = vmatpush.bf16.msra.mxu0 %v2904_v1  ;;  %3139 = vmatpush.bf16.msra.mxu1 %v2904_v1  ;;  %v2913_v46 = vld [vmem:[#allocation2 + $0xb8] sm:$0xff]  ;;  %v2912_v54 = vld [vmem:[#allocation2 + $0xb0] sm:$0xff]  ;;  %v2911_v61 = vld [vmem:[#allocation2 + $0xa8] sm:$0xff]  ;;  %s3179_s17 = smul.u32 84, %s178_s11  ;;  %s3329_s6 = scalar_lea.hbm %s3957_s3, 168 }
  0x1c   : > { %3141 = vmatpush.bf16.msra.mxu3 %v2904_v1  ;;  %3140 = vmatpush.bf16.msra.mxu2 %v2904_v1  ;;  %s3465_s8 = scalar_lea.vmem %s3954_s0, %s3180_s5  ;;  %v2929_v53 = vld [vmem:[#allocation2 + $0x138] sm:$0xff]  ;;  %v2928_v60 = vld [vmem:[#allocation2 + $0x130] sm:$0xff]  ;;  %s3181_s20 = smul.u32 84, %s3423_s16 }
  0x1d   : > { %v3468_v5 = vld [vmem:[%s3465_s8] sm:$0xff]   ;;  %v3471_v6 = vld [vmem:[%s3465_s8 + $0x18] sm:$0xff]  ;;  %v3477_v8 = vld [vmem:[%s3465_s8 + $0x30] sm:$0xff]  ;;  %s3874_s19 = scalar_lea.vmem [#allocation5], %s3179_s17  ;;  %s2401_s16 = scalar_lea.sflag [#allocation4], %s178_s11 }
  0x1e   : > { %v3474_v7 = vld [vmem:[%s3465_s8 + $0x40] sm:$0xff]  ;;  %v299_v9 = vshll.u32 %v3468_v5, 16  ;;  %v3481_v11 = vld [vmem:[%s3465_s8 + $0x8] sm:$0xff]  ;;  %v320_v13 = vshll.u32 %v3471_v6, 16  ;;  %v3492_v16 = vld [vmem:[%s3465_s8 + $0x38] sm:$0xff]  ;;  %v344_v17 = vshll.u32 %v3477_v8, 16  ;;  %s2412_s26 = scalar_lea.hbm %s3957_s3, %s3181_s20 }
  0x1f   : > { %444 = vmatpush.bf16.msra.mxu0 %v2903_v2  ;;  %3142 = vmatpush.bf16.msra.mxu1 %v2903_v2  ;;  %v3484_v12 = vld [vmem:[%s3465_s8 + $0x20] sm:$0xff]  ;;  %v3488_v14 = vld [vmem:[%s3465_s8 + $0x48] sm:$0xff]  ;;  %v360_v15 = vshll.u32 %v3474_v7, 16  ;;  %v297_v18 = vshrl.u32 %v3468_v5, 16  ;;  %v304_v21 = vshll.u32 %v3481_v11, 16  ;;  %v324_v23 = vshrl.u32 %v3471_v6, 16 }
  0x20   : > { %3144 = vmatpush.bf16.msra.mxu3 %v2903_v2  ;;  %3143 = vmatpush.bf16.msra.mxu2 %v2903_v2  ;;  %v301_v19 = vrot.slane %v299_v9, 1  ;;  %v3497_v22 = vrot.slane %v320_v13, 1  ;;  %v328_v24 = vshll.u32 %v3484_v12, 16  ;;  %v364_v26 = vshrl.u32 %v3474_v7, 16  ;;  %v206_v42 = vld [vmem:[%s3465_s8 + $0x50] sm:$0xf] }
  0x21   : > { %v3501_v25 = vrot.slane %v360_v15, 1  ;;  %v368_v27 = vshll.u32 %v3488_v14, 16  ;;  %v3505_v28 = vrot.slane %v344_v17, 1  ;;  %v348_v29 = vshrl.u32 %v3477_v8, 16  ;;  %v223_v43 = vld [vmem:[%s3465_s8 + $0x54] sm:$0x1] }
  0x22   : > { %v352_v30 = vshll.u32 %v3492_v16, 16  ;;  %v302_v32 = vor.u32 %v301_v19, %v297_v18  ;;  %v306_v33 = vrot.slane %v304_v21, 1  ;;  %v326_v34 = vor.u32 %v324_v23, %v3497_v22  ;;  %v3521_v55 = vld [vmem:[%s3465_s8 + $0x10] sm:$0xff]  ;;  %v3524_v56 = vld [vmem:[%s3465_s8 + $0x28] sm:$0xff]  ;;  %v2918_v9 = vld [vmem:[#allocation2 + $0xe0] sm:$0xff]  ;;  %s2413_s27 = sshll.u32 %s3874_s19, 4  ;;  %s2414_s27 = int_to_ptr.vmem [resolvable:$true] %s2413_s27 }
  0x23   : > { %445 = vmatpush.bf16.msra.mxu0 %v2902_v3  ;;  %3145 = vmatpush.bf16.msra.mxu1 %v2902_v3  ;;  %v330_v35 = vrot.slane %v328_v24, 1  ;;  %v366_v36 = vor.u32 %v364_v26, %v3501_v25  ;;  %v370_v37 = vrot.slane %v368_v27, 1  ;;  %v350_v40 = vor.u32 %v348_v29, %v3505_v28  ;;  %v2893_v24 = vld [vmem:[#allocation2 + $0x18] sm:$0xff]  ;;  %v2926_v29 = vld [vmem:[#allocation2 + $0x120] sm:$0xff]  ;;  %s2415_s28 = sshll.u32 %s2412_s26, 4  ;;  %s2416_s28 = int_to_ptr.hbm [resolvable:$true] %s2415_s28 }
  0x24   : > { %3147 = vmatpush.bf16.msra.mxu3 %v2902_v3  ;;  %3146 = vmatpush.bf16.msra.mxu2 %v2902_v3  ;;  %v354_v41 = vrot.slane %v352_v30, 1  ;;  %v307_v44 = vsel %vm295_vm0, %v302_v32, %v306_v33  ;;  %v3517_v49 = vunpack.c.l.b16 %v206_v42  ;;  %v283_v50 = vunpack.c.l.b16 %v223_v43  ;;  %v2917_v27 = vld [vmem:[#allocation2 + $0xd8] sm:$0xff]  ;;  %v3065_v42 = vld [vmem:[%s3465_s8] sm:$0xf0]  ;;  %v2907_v43 = vld [vmem:[#allocation2 + $0x88] sm:$0xff]  ;;  %s3323_s29 = sshra.s32 %s2416_s28, 4  ;;  %s3324_s29 = int_to_ptr.hbm [resolvable:$true] %s3323_s29 }
  0x25   : > { %v331_v45 = vsel %vm295_vm0, %v326_v34, %v330_v35  ;;  %v371_v47 = vsel %vm295_vm0, %v366_v36, %v370_v37  ;;  %v308_v62 = vshrl.u32 %v3481_v11, 16  ;;  %v312_v63 = vshll.u32 %v3521_v55, 16  ;;  %v2909_v32 = vld [vmem:[#allocation2 + $0x98] sm:$0xff]  ;;  %v2892_v34 = vld [vmem:[#allocation2 + $0x10] sm:$0xff]  ;;  %s3325_s30 = scalar_lea.hbm %s3324_s29, 84  ;;  %p3330_p3 = scmp.lt.s32.totalorder %s3324_s29, %s3957_s3 }
  0x26   : > { %v355_v51 = vsel %vm295_vm0, %v350_v40, %v354_v41  ;;  %v3527_v58 = vpack.c.b16 %v283_v50, %v3517_v49  ;;  %v332_v0 = vshrl.u32 %v3484_v12, 16  ;;  %v336_v1 = vshll.u32 %v3524_v56, 16  ;;  %v2916_v36 = vld [vmem:[#allocation2 + $0xd0] sm:$0xff]  ;;  %v2915_v40 = vld [vmem:[#allocation2 + $0xc8] sm:$0xff]  ;;  %v2914_v50 = vld [vmem:[#allocation2 + $0xc0] sm:$0xff]  ;;  %p3326_p0 = scmp.ne.s32.totalorder %s3324_s29, %s3325_s30  ;;  %p3331_p4 = scmp.lt.s32.totalorder %s3329_s6, %s3325_s30 }
  0x27   : > { %446 = vmatpush.bf16.msra.mxu0 %v2901_v4  ;;  %3148 = vmatpush.bf16.msra.mxu1 %v2901_v4  ;;  %v372_v2 = vshrl.u32 %v3488_v14, 16  ;;  %v356_v13 = vshrl.u32 %v3492_v16, 16  ;;  %v310_v15 = vor.u32 %v308_v62, %v306_v33  ;;  %v314_v17 = vrot.slane %v312_v63, 1  ;;  %v3161_v62 = vld [vmem:[%s3465_s8 + $0x4] sm:$0xf0]  }
  0x28   : > { %3150 = vmatpush.bf16.msra.mxu3 %v2901_v4  ;;  %3149 = vmatpush.bf16.msra.mxu2 %v2901_v4  ;;  %v376_v3 = vshll.u32 %v3527_v58, 16  ;;  %v2894_v4 = vld [vmem:[#allocation2 + $0x20] sm:$0xff]  ;;  %v334_v18 = vor.u32 %v332_v0, %v330_v35  ;;  %v338_v19 = vrot.slane %v336_v1, 1  ;;  %v650_v0 = vrot.slane %v3481_v11, 1  ;;  %p3327_p1 = pnand %p3326_p0, %p3440_p5  ;;  %p3332_p7 = por %p3331_p4, %p3330_p3 }
  0x29   : > { %v374_v21 = vor.u32 %v372_v2, %v370_v37  ;;  %v358_v26 = vor.u32 %v356_v13, %v354_v41  ;;  %v315_v30 = vsel %vm295_vm0, %v310_v15, %v314_v17  ;;  %v2925_v37 = vld [vmem:[#allocation2 + $0x118] sm:$0xff]  ;;  %v2924_v41 = vld [vmem:[#allocation2 + $0x110] sm:$0xff]  ;;  %v2922_v1 = vld [vmem:[#allocation2 + $0x100] sm:$0xff] }
  0x2a   : > { %v3536_v23 = vrot.slane %v376_v3, 1  ;;  %v2970_v13 = vld [vmem:[#allocation2 + $0x238] sm:$0xff]  ;;  %p3328_p2 = pneg %p3327_p1 }
  0x2b   : > { %447 = vmatpush.bf16.msra.mxu0 %v2900_v10  ;;  %3151 = vmatpush.bf16.msra.mxu1 %v2900_v10  ;;  %v363_v35 = vsel %vm295_vm0, %v358_v26, %v3501_v25  ;;  %v3066_v25 = vld [vmem:[%s3465_s8] sm:$0xe] }
  0x2c   : > { %3153 = vmatpush.bf16.msra.mxu3 %v2900_v10  ;;  %3152 = vmatpush.bf16.msra.mxu2 %v2900_v10  ;;  %v2927_v10 = vld [vmem:[#allocation2 + $0x128] sm:$0xff]  ;;  %v379_v33 = vsel %vm295_vm0, %v374_v21, %v3536_v23  ;;  %v2936_v21 = vld [vmem:[#allocation2 + $0x170] sm:$0xff]  ;;  %p3333_p8 = pnand %p3332_p7, %p3328_p2 }
  0x2f   : > { %448 = vmatpush.bf16.msra.mxu0 %v2899_v20  ;;  %3154 = vmatpush.bf16.msra.mxu1 %v2899_v20 }
  0x30   : > { %3156 = vmatpush.bf16.msra.mxu3 %v2899_v20  ;;  %3155 = vmatpush.bf16.msra.mxu2 %v2899_v20  ;;  %v2910_v20 = vld [vmem:[#allocation2 + $0xa0] sm:$0xff] }
  0x33   : > { %449 = vmatpush.bf16.msra.mxu0 %v2898_v31  ;;  %3157 = vmatpush.bf16.msra.mxu1 %v2898_v31 }
  0x34   : > { %3159 = vmatpush.bf16.msra.mxu3 %v2898_v31  ;;  %3158 = vmatpush.bf16.msra.mxu2 %v2898_v31  ;;  %v339_v31 = vsel %vm295_vm0, %v334_v18, %v338_v19 }
  0x36   : > { %450 = vmatmul.bf16.vlgmr.msra.gmra.mxu0 %v307_v44  ;;  %465 = vmatmul.bf16.vlgmr.msra.gmra.mxu1 %v331_v45  ;;  %v316_v44 = vshrl.u32 %v3521_v55, 16  ;;  %v340_v45 = vshrl.u32 %v3524_v56, 16 }
  0x37   : > { %565 = vmatpush.bf16.msrb.mxu1 %v2897_v38  ;;  %490 = vmatmul.bf16.vlgmr.msra.gmra.mxu3 %v371_v47  ;;  %v2908_v38 = vld [vmem:[#allocation2 + $0x90] sm:$0xff]  ;;  %v3067_v47 = vor.u32 %v3066_v25, %v3065_v42  ;;  %v2960_v42 = vld [vmem:[#allocation2 + $0x1e8] sm:$0xff] }
  0x38   : > { %987 = vmatpush.bf16.msrb.mxu3 %v2921_v39  ;;  %729 = vmatpush.bf16.msrb.mxu2 %v2913_v46  ;;  %v2891_v39 = vld [vmem:[#allocation2 + $0x8] sm:$0xff]  ;;  %v2890_v46 = vld [vmem:[#allocation2] sm:$0xff] }
  0x39   : > { %480 = vmatmul.bf16.vlgmr.msra.gmra.mxu2 %v355_v51  ;;  %1249 = vmatpush.bf16.msrb.mxu0 %v2929_v53  ;;  %v2962_v51 = vld [vmem:[#allocation2 + $0x1f8] sm:$0xff]  ;;  %v318_v53 = vor.u32 %v316_v44, %v314_v17  ;;  %v649_v63 = vrot.slane %v3067_v47, 1  ;;  %v2935_v25 = vld [vmem:[#allocation2 + $0x168] sm:$0xff]  ;;  %v654_v47 = vrot.slane %v3471_v6, 1 }
  0x3b   : > { %566 = vmatpush.bf16.msrb.mxu1 %v2896_v48  ;;  %v2923_v48 = vld [vmem:[#allocation2 + $0x108] sm:$0xff]  ;;  %v323_v2 = vsel %vm295_vm0, %v318_v53, %v3497_v22  ;;  %v651_v15 = vsel %vm648_vm1, %v649_v63, %v650_v0 }
  0x3c   : > { %988 = vmatpush.bf16.msrb.mxu3 %v2920_v52  ;;  %730 = vmatpush.bf16.msrb.mxu2 %v2912_v54  ;;  %v2937_v52 = vld [vmem:[#allocation2 + $0x178] sm:$0xff]  ;;  %v342_v54 = vor.u32 %v340_v45, %v338_v19 }
  0x3d   : > { %1250 = vmatpush.bf16.msrb.mxu0 %v2928_v60  ;;  %v2954_v60 = vld [vmem:[#allocation2 + $0x1b8] sm:$0xff] }
  0x3e   : > { %v347_v3 = vsel %vm295_vm0, %v342_v54, %v3505_v28  ;;  %v2961_v28 = vld [vmem:[#allocation2 + $0x1f0] sm:$0xff]  ;;  %v2968_v54 = vld [vmem:[#allocation2 + $0x228] sm:$0xff] }
  0x3f   : > { %567 = vmatpush.bf16.msrb.mxu1 %v2895_v57  ;;  %v380_v57 = vshrl.u32 %v3527_v58, 16 }
  0x40   : > { %989 = vmatpush.bf16.msrb.mxu3 %v2919_v59  ;;  %731 = vmatpush.bf16.msrb.mxu2 %v2911_v61  ;;  %v2906_v59 = vld [vmem:[#allocation2 + $0x80] sm:$0xff] }
  0x41   : > { %1251 = vmatpush.bf16.msrb.mxu0 %v2927_v10  ;;  %v3089_v61 = vld [vmem:[%s3465_s8 + $0x4] sm:$0x8] }
  0x42   : > { %v3090_v10 = vor.u32 %v3161_v62, %v3089_v61  ;;  %v656_v62 = vrot.slane %v3484_v12, 1 }
  0x43   : > { %568 = vmatpush.bf16.msrb.mxu1 %v2894_v4  ;;  %v382_v4 = vor.u32 %v380_v57, %v3536_v23  ;;  %v2969_v23 = vld [vmem:[#allocation2 + $0x230] sm:$0xff] }
  0x44   : > { %990 = vmatpush.bf16.msrb.mxu3 %v2918_v9  ;;  %732 = vmatpush.bf16.msrb.mxu2 %v2910_v20  ;;  %v3163_v9 = vld [vmem:[%s3465_s8 + $0xc] sm:$0xff]   ;;  %v1093_v17 = vshrl.u32 %v3090_v10, 16  ;;  %v1096_v18 = vshll.u32 %v3090_v10, 16 }
  0x45   : > { %1252 = vmatpush.bf16.msrb.mxu0 %v2926_v29  ;;  %v1101_v19 = vshrl.u32 %v3163_v9, 16  ;;  %v1104_v22 = vshll.u32 %v3163_v9, 16  ;;  %v2953_v20 = vld [vmem:[#allocation2 + $0x1b0] sm:$0xff] }
  0x46   : > { %455 = vmatmul.bf16.gmra.mxu0 %v315_v30  ;;  %470 = vmatmul.bf16.gmra.mxu1 %v339_v31  ;;  %v1098_v26 = vrot.slane %v1096_v18, 4 }
  0x47   : > { %569 = vmatpush.bf16.msrb.mxu1 %v2893_v24  ;;  %495 = vmatmul.bf16.gmra.mxu3 %v379_v33  ;;  %v1095_v24 = vrot.slane %v1093_v17, 3  ;;  %v1106_v29 = vrot.slane %v1104_v22, 4  ;;  %v908_v33 = vrot.slane %v3163_v9, 3  ;;  %v2959_v9 = vld [vmem:[#allocation2 + $0x1e0] sm:$0xff] }
  0x48   : > { %991 = vmatpush.bf16.msrb.mxu3 %v2917_v27  ;;  %733 = vmatpush.bf16.msrb.mxu2 %v2909_v32  ;;  %v1103_v27 = vrot.slane %v1101_v19, 3  ;;  %v907_v32 = vrot.slane %v3090_v10, 3  ;;  %v2934_v10 = vld [vmem:[#allocation2 + $0x160] sm:$0xff] }
  0x49   : > { %485 = vmatmul.bf16.gmra.mxu2 %v363_v35  ;;  %1253 = vmatpush.bf16.msrb.mxu0 %v2925_v37  ;;  %v1099_v30 = vor.u32 %v1098_v26, %v1095_v24 }
  0x4a   : > { %v1107_v31 = vor.u32 %v1106_v29, %v1103_v27  ;;  %v909_v37 = vsel %vm906_vm3, %v907_v32, %v908_v33  ;;  %v2950_v29 = vld [vmem:[#allocation2 + $0x198] sm:$0xff] }
  0x4b   : > { %570 = vmatpush.bf16.msrb.mxu1 %v2892_v34  ;;  %v652_v34 = vrot.slane %v3521_v55, 1 }
  0x4c   : > { %992 = vmatpush.bf16.msrb.mxu3 %v2916_v36  ;;  %734 = vmatpush.bf16.msrb.mxu2 %v2908_v38  ;;  %v1108_v35 = vsel %vm1091_vm2, %v1099_v30, %v1107_v31  ;;  %v3165_v36 = vld [vmem:[%s3465_s8 + $0x14] sm:$0xff]  }
  0x4d   : > { %1254 = vmatpush.bf16.msrb.mxu0 %v2924_v41  ;;  %v653_v38 = vsel %vm648_vm1, %v650_v0, %v652_v34  ;;  %v2952_v41 = vld [vmem:[#allocation2 + $0x1a8] sm:$0xff]  ;;  %v2958_v30 = vld [vmem:[#allocation2 + $0x1d8] sm:$0xff] }
  0x4e   : > { %v3169_v0 = vld [vmem:[%s3465_s8 + $0x24] sm:$0xff]  }
  0x4f   : > { %571 = vmatpush.bf16.msrb.mxu1 %v2891_v39  ;;  %v1110_v39 = vshrl.u32 %v3165_v36, 16  ;;  %v914_v19 = vrot.slane %v3169_v0, 3 }
  0x50   : > { %993 = vmatpush.bf16.msrb.mxu3 %v2915_v40  ;;  %735 = vmatpush.bf16.msrb.mxu2 %v2907_v43  ;;  %v1113_v40 = vshll.u32 %v3165_v36, 16 }
  0x51   : > { %1255 = vmatpush.bf16.msrb.mxu0 %v2923_v48  ;;  %v1112_v43 = vrot.slane %v1110_v39, 3  ;;  %v3167_v48 = vld [vmem:[%s3465_s8 + $0x1c] sm:$0xff]  }
  0x52   : > { %v1115_v44 = vrot.slane %v1113_v40, 4  ;;  %v1122_v53 = vshll.u32 %v3167_v48, 16  ;;  %v912_v61 = vrot.slane %v3167_v48, 3  ;;  %v2966_v40 = vld [vmem:[#allocation2 + $0x218] sm:$0xff] }
  0x53   : > { %572 = vmatpush.bf16.msrb.mxu1 %v2890_v46  ;;  %v910_v46 = vrot.slane %v3165_v36, 3 }
  0x54   : > { %994 = vmatpush.bf16.msrb.mxu3 %v2914_v50  ;;  %736 = vmatpush.bf16.msrb.mxu2 %v2906_v59  ;;  %v1116_v45 = vor.u32 %v1115_v44, %v1112_v43  ;;  %v1124_v59 = vrot.slane %v1122_v53, 4  ;;  %v662_v44 = vrot.slane %v3492_v16, 1 }
  0x55   : > { %1256 = vmatpush.bf16.msrb.mxu0 %v2922_v1  ;;  %v911_v50 = vsel %vm906_vm3, %v908_v33, %v910_v46  ;;  %v913_v1 = vsel %vm906_vm3, %v910_v46, %v912_v61 }
  0x56   : > { %460 = vmatmul.bf16.gmra.mxu0 %v323_v2  ;;  %475 = vmatmul.bf16.gmra.mxu1 %v347_v3  ;;  %v1128_v2 = vshrl.u32 %v3169_v0, 16  ;;  %v1131_v3 = vshll.u32 %v3169_v0, 16 }
  0x57   : > { %1419 = vmatpush.bf16.msra.mxu1 %v2937_v52  ;;  %500 = vmatmul.bf16.gmra.mxu3 %v382_v4  ;;  %v1119_v52 = vshrl.u32 %v3167_v48, 16  ;;  %v2951_v4 = vld [vmem:[#allocation2 + $0x1a0] sm:$0xff]  ;;  %v2957_v48 = vld [vmem:[#allocation2 + $0x1d0] sm:$0xff] }
  0x58   : > { %1939 = vmatpush.bf16.msra.mxu3 %v2962_v51  ;;  %1677 = vmatpush.bf16.msra.mxu2 %v2954_v60  ;;  %v655_v51 = vsel %vm648_vm1, %v652_v34, %v654_v47  ;;  %v1133_v17 = vrot.slane %v1131_v3, 4  ;;  %v660_v34 = vrot.slane %v3477_v8, 1 }
  0x59   : > { %2123 = vmatpush.bf16.msra.mxu0 %v2970_v13  ;;  %737 = vmatmul.bf16.vlgmr.msrb.gmra.mxu2 %v651_v15  ;;  %v1121_v57 = vrot.slane %v1119_v52, 3  ;;  %v2967_v13 = vld [vmem:[#allocation2 + $0x220] sm:$0xff]  ;;  %v1130_v15 = vrot.slane %v1128_v2, 3 }
  0x5b   : > { %1420 = vmatpush.bf16.msra.mxu1 %v2936_v21  ;;  %v1125_v60 = vor.u32 %v1124_v59, %v1121_v57  ;;  %v1134_v18 = vor.u32 %v1133_v17, %v1130_v15 }
  0x5c   : > { %1678 = vmatpush.bf16.msra.mxu2 %v2953_v20  ;;  %1940 = vmatpush.bf16.msra.mxu3 %v2961_v28  ;;  %v3171_v20 = vld [vmem:[%s3465_s8 + $0x2c] sm:$0xff]   ;;  %v915_v28 = vsel %vm906_vm3, %v912_v61, %v914_v19 }
  0x5d   : > { %2124 = vmatpush.bf16.msra.mxu0 %v2969_v23  ;;  %v1126_v63 = vsel %vm1091_vm2, %v1116_v45, %v1125_v60  ;;  %v1135_v22 = vsel %vm1091_vm2, %v1125_v60, %v1134_v18  ;;  %v1137_v23 = vshrl.u32 %v3171_v20, 16  ;;  %v1140_v24 = vshll.u32 %v3171_v20, 16 }
  0x5e   : > { %v916_v33 = vrot.slane %v3171_v20, 3 }
  0x5f   : > { %1421 = vmatpush.bf16.msra.mxu1 %v2935_v25  ;;  %v1139_v26 = vrot.slane %v1137_v23, 3  ;;  %v1142_v27 = vrot.slane %v1140_v24, 4  ;;  %v2956_v24 = vld [vmem:[#allocation2 + $0x1c8] sm:$0xff] }
  0x60   : > { %1679 = vmatpush.bf16.msra.mxu2 %v2952_v41  ;;  %1941 = vmatpush.bf16.msra.mxu3 %v2960_v42  ;;  %v917_v36 = vsel %vm906_vm3, %v914_v19, %v916_v33 }
  0x61   : > { %2125 = vmatpush.bf16.msra.mxu0 %v2968_v54  ;;  %v1143_v32 = vor.u32 %v1142_v27, %v1139_v26  ;;  %v2932_v54 = vld [vmem:[#allocation2 + $0x150] sm:$0xff]  ;;  %v2931_v26 = vld [vmem:[#allocation2 + $0x148] sm:$0xff] }
  0x63   : > { %1422 = vmatpush.bf16.msra.mxu1 %v2934_v10  ;;  %v3616_v10 = vld [vmem:[%s3465_s8 + $0x44] sm:$0xff]  }
  0x64   : > { %1680 = vmatpush.bf16.msra.mxu2 %v2951_v4  ;;  %1942 = vmatpush.bf16.msra.mxu3 %v2959_v9  ;;  %v1167_v19 = vshll.u32 %v3616_v10, 16 }
  0x65   : > { %2126 = vmatpush.bf16.msra.mxu0 %v2967_v13 }
  0x66   : > { %573 = vmatmul.bf16.vlgmr.msrb.gmra.mxu1 %v3468_v5  ;;  %1257 = vmatmul.bf16.vlgmr.msrb.gmra.mxu0 %v1108_v35  ;;  %v1117_v5 = vsel %vm1091_vm2, %v1107_v31, %v1116_v45  ;;  %v2933_v31 = vld [vmem:[#allocation2 + $0x158] sm:$0xff]  ;;  %v2949_v45 = vld [vmem:[#allocation2 + $0x190] sm:$0xff]  ;;  %v1169_v23 = vrot.slane %v1167_v19, 4 }
  0x67   : > { %995 = vmatmul.bf16.vlgmr.msrb.gmra.mxu3 %v909_v37  ;;  %1423 = vmatpush.bf16.msra.mxu1 %v2933_v31  ;;  %v3173_v35 = vld [vmem:[%s3465_s8 + $0x34] sm:$0xff]  }
  0x68   : > { %1681 = vmatpush.bf16.msra.mxu2 %v2950_v29  ;;  %1943 = vmatpush.bf16.msra.mxu3 %v2958_v30  ;;  %v1149_v39 = vshll.u32 %v3173_v35, 16  ;;  %v918_v43 = vrot.slane %v3173_v35, 3  ;;  %v922_v29 = vrot.slane %v3616_v10, 3  ;;  %v666_v30 = vrot.slane %v3488_v14, 1 }
  0x69   : > { %742 = vmatmul.bf16.gmra.mxu2 %v653_v38  ;;  %v1146_v38 = vshrl.u32 %v3173_v35, 16  ;;  %2127 = vmatpush.bf16.msra.mxu0 %v2966_v40  ;;  %v2964_v35 = vld [vmem:[#allocation2 + $0x208] sm:$0xff] }
  0x6a   : > { %v1151_v42 = vrot.slane %v1149_v39, 4 }
  0x6b   : > { %v1148_v41 = vrot.slane %v1146_v38, 3  ;;  %1424 = vmatpush.bf16.msra.mxu1 %v2932_v54  ;;  %v668_v54 = vrot.slane %v3527_v58, 1 }
  0x6c   : > { %1682 = vmatpush.bf16.msra.mxu2 %v2949_v45  ;;  %1944 = vmatpush.bf16.msra.mxu3 %v2957_v48  ;;  %v3659_v45 = vld [vmem:[%s3465_s8 + $0x50] sm:$0xff]   ;;  %v2955_v48 = vld [vmem:[#allocation2 + $0x1c0] sm:$0xff] }
  0x6d   : > { %v1152_v25 = vor.u32 %v1151_v42, %v1148_v41 }
  0x6f   : > { %1425 = vmatpush.bf16.msra.mxu1 %v2931_v26 }
  0x70   : > { %1945 = vmatpush.bf16.msra.mxu3 %v2956_v24 }
  0x74   : > { %1946 = vmatpush.bf16.msra.mxu3 %v2955_v48 }
  0x76   : > { %578 = vmatmul.bf16.gmra.mxu1 %v3481_v11  ;;  %1262 = vmatmul.bf16.gmra.mxu0 %v1117_v5  ;;  %v657_v11 = vsel %vm648_vm1, %v654_v47, %v656_v62  ;;  %v3175_v5 = vld [vmem:[%s3465_s8 + $0x3c] sm:$0xff]  }
  0x77   : > { %1000 = vmatmul.bf16.gmra.mxu3 %v911_v50  ;;  %v919_v50 = vsel %vm906_vm3, %v916_v33, %v918_v43  ;;  %v1155_v52 = vshrl.u32 %v3175_v5, 16  ;;  %v1158_v53 = vshll.u32 %v3175_v5, 16 }
  0x79   : > { %747 = vmatmul.bf16.gmra.mxu2 %v655_v51  ;;  %v663_v51 = vsel %vm648_vm1, %v660_v34, %v662_v44  ;;  %v1157_v61 = vrot.slane %v1155_v52, 3 }
  0x86   : > { %583 = vmatmul.bf16.gmra.mxu1 %v3521_v55  ;;  %1267 = vmatmul.bf16.gmra.mxu0 %v1126_v63  ;;  %v658_v55 = vrot.slane %v3524_v56, 1  ;;  %v2965_v63 = vld [vmem:[#allocation2 + $0x210] sm:$0xff] }
  0x87   : > { %1005 = vmatmul.bf16.gmra.mxu3 %v913_v1  ;;  %2128 = vmatpush.bf16.msra.mxu0 %v2965_v63  ;;  %v920_v1 = vrot.slane %v3175_v5, 3  ;;  %v1071_v5 = vld [vmem:[%s3465_s8 + $0x58] sm:$0xf] }
  0x88   : > { %v659_v21 = vsel %vm648_vm1, %v656_v62, %v658_v55  ;;  %v661_v37 = vsel %vm648_vm1, %v658_v55, %v660_v34  ;;  %v1160_v62 = vrot.slane %v1158_v53, 4  ;;  %v2948_v55 = vld [vmem:[#allocation2 + $0x188] sm:$0xff]  ;;  %v3663_v52 = vunpack.c.l.b16 %v1071_v5 }
  0x89   : > { %752 = vmatmul.bf16.gmra.mxu2 %v657_v11  ;;  %v664_v11 = vrot.slane %v3474_v7, 1  ;;  %v921_v13 = vsel %vm906_vm3, %v918_v43, %v920_v1 }
  0x8a   : > { %1683 = vmatpush.bf16.msra.mxu2 %v2948_v55 }
  0x8b   : > { %v665_v17 = vsel %vm648_vm1, %v662_v44, %v664_v11  ;;  %v667_v38 = vsel %vm648_vm1, %v664_v11, %v666_v30  ;;  %2129 = vmatpush.bf16.msra.mxu0 %v2964_v35  ;;  %v2930_v11 = vld [vmem:[#allocation2 + $0x140] sm:$0xff] }
  0x8c   : > { %1426 = vmatpush.bf16.msra.mxu1 %v2930_v11 }
  0x96   : > { %588 = vmatmul.bf16.gmra.mxu1 %v3471_v6  ;;  %1272 = vmatmul.bf16.gmra.mxu0 %v1135_v22  ;;  %v1144_v6 = vsel %vm1091_vm2, %v1134_v18, %v1143_v32  ;;  %v1164_v18 = vshrl.u32 %v3616_v10, 16 }
  0x97   : > { %1010 = vmatmul.bf16.gmra.mxu3 %v915_v28 }
  0x99   : > { %757 = vmatmul.bf16.gmra.mxu2 %v659_v21  ;;  %v1166_v21 = vrot.slane %v1164_v18, 3  ;;  %v834_v18 = vld [vmem:[%s3465_s8 + $0x58] sm:$0x7] }
  0x9b   : > { %v1170_v27 = vor.u32 %v1169_v23, %v1166_v21  ;;  %v2963_v21 = vld [vmem:[#allocation2 + $0x200] sm:$0xff]  ;;  %v894_v23 = vunpack.c.l.b16 %v834_v18 }
  0x9c   : > { %2130 = vmatpush.bf16.msra.mxu0 %v2963_v21 }
  0xa6   : > { %593 = vmatmul.bf16.gmra.mxu1 %v3484_v12  ;;  %1277 = vmatmul.bf16.gmra.mxu0 %v1144_v6  ;;  %v1153_v12 = vsel %vm1091_vm2, %v1143_v32, %v1152_v25  ;;  %v3643_v6 = vld [vmem:[%s3465_s8 + $0x4c] sm:$0xff]  }
  0xa7   : > { %1015 = vmatmul.bf16.gmra.mxu3 %v917_v36  ;;  %v923_v36 = vsel %vm906_vm3, %v920_v1, %v922_v29  ;;  %v1173_v39 = vshrl.u32 %v3643_v6, 16  ;;  %v1176_v40 = vshll.u32 %v3643_v6, 16  ;;  %v924_v53 = vrot.slane %v3643_v6, 3 }
  0xa9   : > { %762 = vmatmul.bf16.gmra.mxu2 %v661_v37  ;;  %v1175_v43 = vrot.slane %v1173_v39, 3  ;;  %v1178_v44 = vrot.slane %v1176_v40, 4  ;;  %v925_v10 = vsel %vm906_vm3, %v922_v29, %v924_v53 }
  0xb3   : > { %v3590_v46 = vpop.f32.mrf.mxu0  ;;  %v3592_v47 = vpop.f32.mrf.mxu1 }
  0xb6   : > { %598 = vmatmul.bf16.gmra.mxu1 %v3524_v56  ;;  %1282 = vmatmul.bf16.gmra.mxu0 %v1153_v12  ;;  %v1161_v56 = vor.u32 %v1160_v62, %v1157_v61 }
  0xb7   : > { %1020 = vmatmul.bf16.gmra.mxu3 %v919_v50  ;;  %v1179_v50 = vor.u32 %v1178_v44, %v1175_v43 }
  0xb8   : > { %v1162_v9 = vsel %vm1091_vm2, %v1152_v25, %v1161_v56  ;;  %v1171_v34 = vsel %vm1091_vm2, %v1161_v56, %v1170_v27 }
  0xb9   : > { %767 = vmatmul.bf16.gmra.mxu2 %v663_v51  ;;  %v3014_v51 = vunpack.c.h.b16 %v3659_v45  ;;  %v1180_v56 = vsel %vm1091_vm2, %v1170_v27, %v1179_v50 }
  0xba   : > { %v3599_v57 = vpop.f32.mrf.mxu3 }
  0xbb   : > { %v3601_v59 = vpop.f32.mrf.mxu0  ;;  %v3603_v60 = vpop.f32.mrf.mxu1  ;;  %v1090_v1 = vpack.c.b16 %v3663_v52, %v3014_v51  ;;  %v905_v35 = vpack.c.b16 %v894_v23, %v3014_v51 }
  0xbc   : > { %v3605_v0 = vpop.f32.mrf.mxu2 }
  0xbd   : > { %v1182_v19 = vshrl.u32 %v1090_v1, 16  ;;  %v1185_v55 = vshll.u32 %v1090_v1, 16  ;;  %v926_v39 = vrot.slane %v905_v35, 3 }
  0xbf   : > { %v1184_v29 = vrot.slane %v1182_v19, 3  ;;  %v927_v48 = vsel %vm906_vm3, %v924_v53, %v926_v39 }
  0xc2   : > { %v3608_v2 = vpop.f32.mrf.mxu3 }
  0xc3   : > { %v3610_v3 = vpop.f32.mrf.mxu0  ;;  %v3612_v4 = vpop.f32.mrf.mxu1 }
  0xc4   : > { %v3619_v15 = vpop.f32.mrf.mxu2 }
  0xc6   : > { %603 = vmatmul.bf16.gmra.mxu1 %v3477_v8  ;;  %1287 = vmatmul.bf16.gmra.mxu0 %v1162_v9 }
  0xc7   : > { %1025 = vmatmul.bf16.gmra.mxu3 %v921_v13 }
  0xc9   : > { %772 = vmatmul.bf16.gmra.mxu2 %v665_v17  ;;  %v669_v17 = vsel %vm648_vm1, %v666_v30, %v668_v54 }
  0xca   : > { %v3625_v22 = vpop.f32.mrf.mxu3 }
  0xcb   : > { %v3627_v20 = vpop.f32.mrf.mxu0  ;;  %v3629_v28 = vpop.f32.mrf.mxu1 }
  0xcc   : > { %v3631_v8 = vpop.f32.mrf.mxu2 }
  0xd2   : > { %v3635_v31 = vpop.f32.mrf.mxu3 }
  0xd3   : > { %v3637_v32 = vpop.f32.mrf.mxu0  ;;  %v3639_v33 = vpop.f32.mrf.mxu1 }
  0xd4   : > { %v3646_v37 = vpop.f32.mrf.mxu2 }
  0xd6   : > { %608 = vmatmul.bf16.gmra.mxu1 %v3492_v16  ;;  %1292 = vmatmul.bf16.gmra.mxu0 %v1171_v34  ;;  %v2947_v16 = vld [vmem:[#allocation2 + $0x180] sm:$0xff]  ;;  %v1187_v34 = vrot.slane %v1185_v55, 4  ;;  %v505_v55 = vpack.c.b16 %v3517_v49, %v3517_v49 }
  0xd7   : > { %1030 = vmatmul.bf16.gmra.mxu3 %v923_v36  ;;  %1684 = vmatpush.bf16.msra.mxu2 %v2947_v16 }
  0xd9   : > { %777 = vmatmul.bf16.gmra.mxu2 %v667_v38  ;;  %v1188_v38 = vor.u32 %v1187_v34, %v1184_v29 }
  0xda   : > { %v3652_v41 = vpop.f32.mrf.mxu3 }
  0xdb   : > { %v3654_v42 = vpop.f32.mrf.mxu0  ;;  %v3656_v25 = vpop.f32.mrf.mxu1  ;;  %v1189_v5 = vsel %vm1091_vm2, %v1179_v50, %v1188_v38 }
  0xdc   : > { %v738_v12 = vpop.f32.mrf.mxu2 }
  0xe2   : > { %v503_v61 = vpop.f32.mrf.mxu3 }
  0xe3   : > { %v574_v62 = vpop.f32.mrf.mxu1  ;;  %v1258_v63 = vpop.f32.mrf.mxu0 }
  0xe4   : > { %v575_v9 = vadd.f32 %v574_v62, %v3590_v46  ;;  %v740_v13 = vpop.f32.mrf.mxu2  ;;  %v1503_v62 = vld [vmem:[%s3465_s8 + $0xc] sm:$0xc] }
  0xe6   : > { %613 = vmatmul.bf16.gmra.mxu1 %v3474_v7  ;;  %1297 = vmatmul.bf16.gmra.mxu0 %v1180_v56  ;;  %v792_v58 = vadd.f32 %v738_v12, %v575_v9  ;;  %v1563_v56 = vunpack.c.l.b16 %v1503_v62 }
  0xe7   : > { %1035 = vmatmul.bf16.gmra.mxu3 %v925_v10 }
  0xe9   : > { %782 = vmatmul.bf16.gmra.mxu2 %v669_v17 }
  0xea   : > { %v996_v24 = vpop.f32.mrf.mxu3 }
  0xeb   : > { %v1050_v46 = vadd.f32 %v996_v24, %v792_v58  ;;  %v576_v26 = vpop.f32.mrf.mxu1  ;;  %v1260_v27 = vpop.f32.mrf.mxu0 }
  0xec   : > { %v577_v30 = vadd.f32 %v576_v26, %v3601_v59  ;;  %v743_v6 = vpop.f32.mrf.mxu2  ;;  %v2023_v26 = vld [vmem:[%s3465_s8 + $0xc] sm:$0x8] }
  0xed   : > { %v3675_v7 = vadd.f32 %v1258_v63, %v1050_v46  ;;  %v1504_v63 = vld [vmem:[%s3465_s8 + $0x10] sm:$0xf] }
  0xee   : > { %v793_v36 = vadd.f32 %v740_v13, %v577_v30  ;;  %v1564_v1 = vunpack.c.l.b16 %v1504_v63  ;;  %v3687_v13 = vld [vmem:[%s3465_s8 + $0x14] sm:$0xff] }
  0xef   : > { %v1598_v19 = vrot.slane %v3687_v13, 2  ;;  %v1791_v35 = vshrl.u32 %v3687_v13, 16 }
  0xf0   : > { %v1585_v17 = vpack.c.b16 %v1564_v1, %v1563_v56 }
  0xf2   : > { %v998_v40 = vpop.f32.mrf.mxu3  ;;  %v1597_v58 = vrot.slane %v1585_v17, 2  ;;  %v1783_v30 = vshrl.u32 %v1585_v17, 16  ;;  %v1786_v49 = vshll.u32 %v1585_v17, 16  ;;  %v3068_v17 = vld [vmem:[%s3465_s8 + $0x8] sm:$0xff]  }
  0xf3   : > { %v1051_v43 = vadd.f32 %v998_v40, %v793_v36  ;;  %v579_v44 = vpop.f32.mrf.mxu1  ;;  %v1263_v12 = vpop.f32.mrf.mxu0  ;;  %v1794_v36 = vshll.u32 %v3687_v13, 16 }
  0xf4   : > { %v580_v16 = vadd.f32 %v579_v44, %v3610_v3  ;;  %v745_v59 = vpop.f32.mrf.mxu2 }
  0xf5   : > { %v3680_v61 = vadd.f32 %v1260_v27, %v1051_v43  ;;  %v1599_v27 = vsel %vm1596_vm4, %v1597_v58, %v1598_v19 }
  0xf6   : > { %618 = vmatmul.bf16.gmra.mxu1 %v3488_v14  ;;  %1302 = vmatmul.bf16.gmra.mxu0 %v1189_v5  ;;  %v794_v51 = vadd.f32 %v743_v6, %v580_v16  ;;  %v2041_v6 = vunpack.c.l.b16 %v2023_v26 }
  0xf7   : > { %1040 = vmatmul.bf16.gmra.mxu3 %v927_v48  ;;  %v1788_v48 = vrot.slane %v1786_v49, 3  ;;  %v3720_v49 = vld [vmem:[%s3465_s8 + $0x24] sm:$0xff] }
  0xf8   : > { %v2042_v5 = vpack.c.b16 %v1564_v1, %v2041_v6 }
  0xf9   : > { %787 = vmatmul.bf16.gmra.mxu2 %v668_v54 }
  0xfa   : > { %v1001_v11 = vpop.f32.mrf.mxu3  ;;  %v2043_v56 = vrot.slane %v2042_v5, 3 }
  0xfb   : > { %v1052_v50 = vadd.f32 %v1001_v11, %v794_v51  ;;  %v581_v9 = vpop.f32.mrf.mxu1  ;;  %v1265_v3 = vpop.f32.mrf.mxu0  ;;  %v3703_v51 = vld [vmem:[%s3465_s8 + $0x1c] sm:$0xff]  ;;  %v2044_v11 = vrot.slane %v3687_v13, 3 }
  0xfc   : > { %v582_v53 = vadd.f32 %v581_v9, %v3627_v20  ;;  %v748_v10 = vpop.f32.mrf.mxu2  ;;  %v1600_v1 = vrot.slane %v3703_v51, 2 }
  0xfd   : > { %v3689_v14 = vadd.f32 %v1263_v12, %v1052_v50  ;;  %v1785_v12 = vrot.slane %v1783_v30, 2 }
  0xfe   : > { %v795_v18 = vadd.f32 %v745_v59, %v582_v53  ;;  %v1796_v59 = vrot.slane %v1794_v36, 3 }
  0xff   : > { %v1789_v50 = vor.u32 %v1788_v48, %v1785_v12 }
 0x102   : > { %v1003_v54 = vpop.f32.mrf.mxu3 }
 0x103   : > { %v1053_v21 = vadd.f32 %v1003_v54, %v795_v18  ;;  %v584_v23 = vpop.f32.mrf.mxu1  ;;  %v1268_v24 = vpop.f32.mrf.mxu0  ;;  %v2045_v18 = vsel %vm906_vm3, %v2043_v56, %v2044_v11 }
 0x104   : > { %v585_v20 = vadd.f32 %v584_v23, %v3637_v32  ;;  %v750_v46 = vpop.f32.mrf.mxu2 }
 0x105   : > { %v3697_v29 = vadd.f32 %v1265_v3, %v1053_v21  ;;  %v1601_v21 = vsel %vm1596_vm4, %v1598_v19, %v1600_v1 }
 0x106   : > { %623 = vmatmul.bf16.gmra.mxu1 %v505_v55  ;;  %1307 = vmatmul.bf16.gmra.mxu0 %v1188_v38  ;;  %v796_v34 = vadd.f32 %v748_v10, %v585_v20  ;;  %v1803_v20 = vshll.u32 %v3703_v51, 16 }
 0x107   : > { %1045 = vmatmul.bf16.gmra.mxu3 %v926_v39  ;;  %v1793_v39 = vrot.slane %v1791_v35, 2 }
 0x108   : > { %v1805_v6 = vrot.slane %v1803_v20, 3 }
 0x109   : > { %1685 = vmatmul.bf16.vlgmr.msra.gmra.mxu2 %v1599_v27  ;;  %v1797_v9 = vor.u32 %v1796_v59, %v1793_v39 }
 0x10a   : > { %v1006_v32 = vpop.f32.mrf.mxu3 }
 0x10b   : > { %v1054_v40 = vadd.f32 %v1006_v32, %v796_v34  ;;  %v586_v43 = vpop.f32.mrf.mxu1  ;;  %v1270_v44 = vpop.f32.mrf.mxu0  ;;  %v1798_v54 = vsel %vm1781_vm5, %v1789_v50, %v1797_v9  ;;  %v2046_v32 = vrot.slane %v3703_v51, 3  ;;  %v1809_v50 = vshrl.u32 %v3720_v49, 16 }
 0x10c   : > { %v587_v16 = vadd.f32 %v586_v43, %v3654_v42  ;;  %v753_v38 = vpop.f32.mrf.mxu2  ;;  %v1602_v43 = vrot.slane %v3720_v49, 2 }
 0x10d   : > { %v3705_v62 = vadd.f32 %v1268_v24, %v1054_v40  ;;  %v1800_v24 = vshrl.u32 %v3703_v51, 16 }
 0x10e   : > { %v797_v63 = vadd.f32 %v750_v46, %v587_v16 }
 0x10f   : > { %v1802_v30 = vrot.slane %v1800_v24, 2 }
 0x111   : > { %v1806_v40 = vor.u32 %v1805_v6, %v1802_v30 }
 0x112   : > { %v1008_v3 = vpop.f32.mrf.mxu3 }
 0x113   : > { %v1055_v42 = vadd.f32 %v1008_v3, %v797_v63  ;;  %v589_v53 = vpop.f32.mrf.mxu1  ;;  %v1273_v10 = vpop.f32.mrf.mxu0  ;;  %v1807_v39 = vsel %vm1781_vm5, %v1797_v9, %v1806_v40  ;;  %v1603_v63 = vsel %vm1596_vm4, %v1600_v1, %v1602_v43  ;;  %v1812_v3 = vshll.u32 %v3720_v49, 16 }
 0x114   : > { %v590_v58 = vadd.f32 %v589_v53, %v3592_v47  ;;  %v755_v55 = vpop.f32.mrf.mxu2 }
 0x115   : > { %v3714_v13 = vadd.f32 %v1270_v44, %v1055_v42 }
 0x116   : > { %1427 = vmatmul.bf16.vlgmr.msra.gmra.mxu1 %v3068_v17  ;;  %2131 = vmatmul.bf16.vlgmr.msra.gmra.mxu0 %v2045_v18  ;;  %v798_v23 = vadd.f32 %v753_v38, %v590_v58  ;;  %v3069_v38 = vld [vmem:[%s3465_s8 + $0x10] sm:$0xff]   ;;  %v1814_v17 = vrot.slane %v1812_v3, 3 }
 0x117   : > { %1947 = vmatmul.bf16.vlgmr.msra.gmra.mxu3 %v1798_v54  ;;  %v3737_v18 = vld [vmem:[%s3465_s8 + $0x2c] sm:$0xff] }
 0x119   : > { %1690 = vmatmul.bf16.gmra.mxu2 %v1601_v21 }
 0x11a   : > { %v1011_v46 = vpop.f32.mrf.mxu3 }
 0x11b   : > { %v1056_v26 = vadd.f32 %v1011_v46, %v798_v23  ;;  %v591_v47 = vpop.f32.mrf.mxu1  ;;  %v1275_v27 = vpop.f32.mrf.mxu0  ;;  %v1604_v23 = vrot.slane %v3737_v18, 2 }
 0x11c   : > { %v592_v34 = vadd.f32 %v591_v47, %v3603_v60  ;;  %v758_v19 = vpop.f32.mrf.mxu2  ;;  %v2047_v60 = vsel %vm906_vm3, %v2044_v11, %v2046_v32  ;;  %v3070_v47 = vld [vmem:[%s3465_s8 + $0x18] sm:$0xff]  }
 0x11d   : > { %v3722_v35 = vadd.f32 %v1273_v10, %v1056_v26  ;;  %v1811_v10 = vrot.slane %v1809_v50, 2  ;;  %v1605_v30 = vsel %vm1596_vm4, %v1602_v43, %v1604_v23 }
 0x11e   : > { %v799_v36 = vadd.f32 %v755_v55, %v592_v34  ;;  %v2048_v55 = vrot.slane %v3720_v49, 3 }
 0x11f   : > { %v1815_v21 = vor.u32 %v1814_v17, %v1811_v10 }
 0x121   : > { %v1816_v34 = vsel %vm1781_vm5, %v1806_v40, %v1815_v21 }
 0x122   : > { %v1013_v44 = vpop.f32.mrf.mxu3 }
 0x123   : > { %v1057_v12 = vadd.f32 %v1013_v44, %v799_v36  ;;  %v594_v5 = vpop.f32.mrf.mxu1  ;;  %v1278_v16 = vpop.f32.mrf.mxu0  ;;  %v1818_v36 = vshrl.u32 %v3737_v18, 16  ;;  %v1821_v44 = vshll.u32 %v3737_v18, 16 }
 0x124   : > { %v595_v48 = vadd.f32 %v594_v5, %v3612_v4  ;;  %v760_v59 = vpop.f32.mrf.mxu2 }
 0x125   : > { %v3731_v56 = vadd.f32 %v1275_v27, %v1057_v12 }
 0x126   : > { %1432 = vmatmul.bf16.gmra.mxu1 %v3069_v38  ;;  %2136 = vmatmul.bf16.gmra.mxu0 %v2047_v60  ;;  %v800_v51 = vadd.f32 %v758_v19, %v595_v48  ;;  %v1823_v38 = vrot.slane %v1821_v44, 3  ;;  %v3754_v60 = vld [vmem:[%s3465_s8 + $0x34] sm:$0xff] }
 0x127   : > { %1952 = vmatmul.bf16.gmra.mxu3 %v1807_v39 }
 0x129   : > { %1695 = vmatmul.bf16.gmra.mxu2 %v1603_v63 }
 0x12a   : > { %v1016_v11 = vpop.f32.mrf.mxu3 }
 0x12b   : > { %v1058_v42 = vadd.f32 %v1016_v11, %v800_v51  ;;  %v596_v4 = vpop.f32.mrf.mxu1  ;;  %v1280_v9 = vpop.f32.mrf.mxu0  ;;  %v1606_v51 = vrot.slane %v3754_v60, 2 }
 0x12c   : > { %v597_v53 = vadd.f32 %v596_v4, %v3629_v28  ;;  %v763_v1 = vpop.f32.mrf.mxu2  ;;  %v2049_v28 = vsel %vm906_vm3, %v2046_v32, %v2048_v55  ;;  %v3071_v4 = vld [vmem:[%s3465_s8 + $0x20] sm:$0xff]  }
 0x12d   : > { %v3739_v58 = vadd.f32 %v1278_v16, %v1058_v42  ;;  %v1820_v16 = vrot.slane %v1818_v36, 2  ;;  %v1607_v10 = vsel %vm1596_vm4, %v1604_v23, %v1606_v51 }
 0x12e   : > { %v801_v54 = vadd.f32 %v760_v59, %v597_v53  ;;  %v2050_v59 = vrot.slane %v3737_v18, 3 }
 0x12f   : > { %v1824_v63 = vor.u32 %v1823_v38, %v1820_v16 }
 0x131   : > { %v1825_v53 = vsel %vm1781_vm5, %v1815_v21, %v1824_v63 }
 0x132   : > { %v1018_v24 = vpop.f32.mrf.mxu3 }
 0x133   : > { %v1059_v20 = vadd.f32 %v1018_v24, %v801_v54  ;;  %v599_v46 = vpop.f32.mrf.mxu1  ;;  %v1283_v26 = vpop.f32.mrf.mxu0  ;;  %v1827_v54 = vshrl.u32 %v3754_v60, 16  ;;  %v1830_v24 = vshll.u32 %v3754_v60, 16 }
 0x134   : > { %v600_v27 = vadd.f32 %v599_v46, %v3639_v33  ;;  %v765_v19 = vpop.f32.mrf.mxu2 }
 0x135   : > { %v3748_v6 = vadd.f32 %v1280_v9, %v1059_v20 }
 0x136   : > { %1437 = vmatmul.bf16.gmra.mxu1 %v3070_v47  ;;  %2141 = vmatmul.bf16.gmra.mxu0 %v2049_v28  ;;  %v802_v49 = vadd.f32 %v763_v1, %v600_v27  ;;  %v1832_v47 = vrot.slane %v1830_v24, 3  ;;  %v3771_v28 = vld [vmem:[%s3465_s8 + $0x3c] sm:$0xff] }
 0x137   : > { %1957 = vmatmul.bf16.gmra.mxu3 %v1816_v34 }
 0x139   : > { %1700 = vmatmul.bf16.gmra.mxu2 %v1605_v30 }
 0x13a   : > { %v1021_v32 = vpop.f32.mrf.mxu3 }
 0x13b   : > { %v1060_v12 = vadd.f32 %v1021_v32, %v802_v49  ;;  %v601_v33 = vpop.f32.mrf.mxu1  ;;  %v1285_v40 = vpop.f32.mrf.mxu0  ;;  %v1608_v49 = vrot.slane %v3771_v28, 2 }
 0x13c   : > { %v602_v5 = vadd.f32 %v601_v33, %v3656_v25  ;;  %v768_v43 = vpop.f32.mrf.mxu2  ;;  %v2051_v25 = vsel %vm906_vm3, %v2048_v55, %v2050_v59  ;;  %v3072_v33 = vld [vmem:[%s3465_s8 + $0x28] sm:$0xff]  }
 0x13d   : > { %v3756_v48 = vadd.f32 %v1283_v26, %v1060_v12  ;;  %v1829_v26 = vrot.slane %v1827_v54, 2  ;;  %v1609_v16 = vsel %vm1596_vm4, %v1606_v51, %v1608_v49 }
 0x13e   : > { %v803_v39 = vadd.f32 %v765_v19, %v602_v5  ;;  %v2052_v19 = vrot.slane %v3754_v60, 3 }
 0x13f   : > { %v1833_v30 = vor.u32 %v1832_v47, %v1829_v26 }
 0x141   : > { %v1834_v5 = vsel %vm1781_vm5, %v1824_v63, %v1833_v30 }
 0x142   : > { %v1023_v50 = vpop.f32.mrf.mxu3 }
 0x143   : > { %v1061_v3 = vadd.f32 %v1023_v50, %v803_v39  ;;  %v604_v11 = vpop.f32.mrf.mxu1  ;;  %v1288_v42 = vpop.f32.mrf.mxu0  ;;  %v1836_v39 = vshrl.u32 %v3771_v28, 16  ;;  %v1839_v50 = vshll.u32 %v3771_v28, 16 }
 0x144   : > { %v605_v9 = vadd.f32 %v604_v11, %v3605_v0  ;;  %v770_v1 = vpop.f32.mrf.mxu2 }
 0x145   : > { %v3765_v17 = vadd.f32 %v1285_v40, %v1061_v3 }
 0x146   : > { %1442 = vmatmul.bf16.gmra.mxu1 %v3071_v4  ;;  %2146 = vmatmul.bf16.gmra.mxu0 %v2051_v25  ;;  %v804_v18 = vadd.f32 %v768_v43, %v605_v9  ;;  %v1841_v4 = vrot.slane %v1839_v50, 3  ;;  %v3788_v25 = vld [vmem:[%s3465_s8 + $0x44] sm:$0xff] }
 0x147   : > { %1962 = vmatmul.bf16.gmra.mxu3 %v1825_v53 }
 0x149   : > { %1705 = vmatmul.bf16.gmra.mxu2 %v1607_v10 }
 0x14a   : > { %v1026_v55 = vpop.f32.mrf.mxu3 }
 0x14b   : > { %v1062_v20 = vadd.f32 %v1026_v55, %v804_v18  ;;  %v606_v0 = vpop.f32.mrf.mxu1  ;;  %v1290_v21 = vpop.f32.mrf.mxu0  ;;  %v1610_v18 = vrot.slane %v3788_v25, 2 }
 0x14c   : > { %v607_v46 = vadd.f32 %v606_v0, %v3619_v15  ;;  %v773_v23 = vpop.f32.mrf.mxu2  ;;  %v2053_v15 = vsel %vm906_vm3, %v2050_v59, %v2052_v19  ;;  %v3073_v0 = vld [vmem:[%s3465_s8 + $0x30] sm:$0xff]  }
 0x14d   : > { %v3773_v27 = vadd.f32 %v1288_v42, %v1062_v20  ;;  %v1838_v42 = vrot.slane %v1836_v39, 2  ;;  %v1611_v26 = vsel %vm1596_vm4, %v1608_v49, %v1610_v18 }
 0x14e   : > { %v805_v34 = vadd.f32 %v770_v1, %v607_v46  ;;  %v2054_v1 = vrot.slane %v3771_v28, 3 }
 0x14f   : > { %v1842_v10 = vor.u32 %v1841_v4, %v1838_v42 }
 0x151   : > { %v1843_v46 = vsel %vm1781_vm5, %v1833_v30, %v1842_v10 }
 0x152   : > { %v1028_v36 = vpop.f32.mrf.mxu3 }
 0x153   : > { %v1063_v44 = vadd.f32 %v1028_v36, %v805_v34  ;;  %v609_v32 = vpop.f32.mrf.mxu1  ;;  %v1293_v12 = vpop.f32.mrf.mxu0  ;;  %v1845_v34 = vshrl.u32 %v3788_v25, 16  ;;  %v1848_v36 = vshll.u32 %v3788_v25, 16 }
 0x154   : > { %v610_v40 = vadd.f32 %v609_v32, %v3631_v8  ;;  %v775_v43 = vpop.f32.mrf.mxu2 }
 0x155   : > { %v3782_v38 = vadd.f32 %v1290_v21, %v1063_v44 }
 0x156   : > { %1447 = vmatmul.bf16.gmra.mxu1 %v3072_v33  ;;  %2151 = vmatmul.bf16.gmra.mxu0 %v2053_v15  ;;  %v806_v60 = vadd.f32 %v773_v23, %v610_v40  ;;  %v1850_v33 = vrot.slane %v1848_v36, 3  ;;  %v3805_v15 = vld [vmem:[%s3465_s8 + $0x4c] sm:$0xff] }
 0x157   : > { %1967 = vmatmul.bf16.gmra.mxu3 %v1834_v5 }
 0x159   : > { %1710 = vmatmul.bf16.gmra.mxu2 %v1609_v16 }
 0x15a   : > { %v1031_v59 = vpop.f32.mrf.mxu3 }
 0x15b   : > { %v1064_v3 = vadd.f32 %v1031_v59, %v806_v60  ;;  %v611_v8 = vpop.f32.mrf.mxu1  ;;  %v1295_v63 = vpop.f32.mrf.mxu0  ;;  %v1612_v60 = vrot.slane %v3805_v15, 2 }
 0x15c   : > { %v612_v11 = vadd.f32 %v611_v8, %v3646_v37  ;;  %v778_v51 = vpop.f32.mrf.mxu2  ;;  %v2055_v37 = vsel %vm906_vm3, %v2052_v19, %v2054_v1  ;;  %v3074_v8 = vld [vmem:[%s3465_s8 + $0x38] sm:$0xff]  }
 0x15d   : > { %v3790_v9 = vadd.f32 %v1293_v12, %v1064_v3  ;;  %v1847_v12 = vrot.slane %v1845_v34, 2  ;;  %v1613_v42 = vsel %vm1596_vm4, %v1610_v18, %v1612_v60 }
 0x15e   : > { %v807_v53 = vadd.f32 %v775_v43, %v612_v11  ;;  %v2056_v43 = vrot.slane %v3788_v25, 3 }
 0x15f   : > { %v1851_v16 = vor.u32 %v1850_v33, %v1847_v12 }
 0x161   : > { %v1852_v11 = vsel %vm1781_vm5, %v1842_v10, %v1851_v16 }
 0x162   : > { %v1033_v54 = vpop.f32.mrf.mxu3 }
 0x163   : > { %v1065_v24 = vadd.f32 %v1033_v54, %v807_v53  ;;  %v614_v55 = vpop.f32.mrf.mxu1  ;;  %v1298_v20 = vpop.f32.mrf.mxu0  ;;  %v1854_v53 = vshrl.u32 %v3805_v15, 16  ;;  %v1857_v54 = vshll.u32 %v3805_v15, 16 }
 0x164   : > { %v615_v21 = vadd.f32 %v614_v55, %v3599_v57  ;;  %v780_v23 = vpop.f32.mrf.mxu2 }
 0x165   : > { %v3799_v47 = vadd.f32 %v1295_v63, %v1065_v24 }
 0x166   : > { %1452 = vmatmul.bf16.gmra.mxu1 %v3073_v0  ;;  %2156 = vmatmul.bf16.gmra.mxu0 %v2055_v37  ;;  %v808_v28 = vadd.f32 %v778_v51, %v615_v21  ;;  %v1859_v0 = vrot.slane %v1857_v54, 3  ;;  %v3822_v37 = vld [vmem:[%s3465_s8 + $0x54] sm:$0xff] }
 0x167   : > { %1972 = vmatmul.bf16.gmra.mxu3 %v1843_v46 }
 0x169   : > { %1715 = vmatmul.bf16.gmra.mxu2 %v1611_v26 }
 0x16a   : > { %v1036_v19 = vpop.f32.mrf.mxu3 }
 0x16b   : > { %v1066_v44 = vadd.f32 %v1036_v19, %v808_v28  ;;  %v616_v57 = vpop.f32.mrf.mxu1  ;;  %v1300_v30 = vpop.f32.mrf.mxu0  ;;  %v1614_v28 = vrot.slane %v3822_v37, 2 }
 0x16c   : > { %v617_v32 = vadd.f32 %v616_v57, %v3608_v2  ;;  %v783_v49 = vpop.f32.mrf.mxu2  ;;  %v2057_v2 = vsel %vm906_vm3, %v2054_v1, %v2056_v43 }
 0x16d   : > { %v3807_v40 = vadd.f32 %v1298_v20, %v1066_v44  ;;  %v1856_v20 = vrot.slane %v1854_v53, 2  ;;  %v1615_v12 = vsel %vm1596_vm4, %v1612_v60, %v1614_v28  ;;  %v2060_v53 = vrot.slane %v3822_v37, 3 }
 0x16e   : > { %v809_v5 = vadd.f32 %v780_v23, %v617_v32  ;;  %v2058_v23 = vrot.slane %v3805_v15, 3 }
 0x16f   : > { %v1860_v26 = vor.u32 %v1859_v0, %v1856_v20 }
 0x170   : > { %v2059_v57 = vsel %vm906_vm3, %v2056_v43, %v2058_v23  ;;  %v1866_v43 = vshll.u32 %v3822_v37, 16  ;;  %v2061_v20 = vsel %vm906_vm3, %v2058_v23, %v2060_v53 }
 0x171   : > { %v1861_v32 = vsel %vm1781_vm5, %v1851_v16, %v1860_v26 }
 0x172   : > { %v1038_v39 = vpop.f32.mrf.mxu3 }
 0x173   : > { %v1067_v50 = vadd.f32 %v1038_v39, %v809_v5  ;;  %v619_v59 = vpop.f32.mrf.mxu1  ;;  %v1303_v3 = vpop.f32.mrf.mxu0  ;;  %v1523_v5 = vld [vmem:[%s3465_s8 + $0x5c] sm:$0xf]  ;;  %v1524_v39 = vld [vmem:[%s3465_s8 + $0x60] sm:$0x3] }
 0x174   : > { %v620_v63 = vadd.f32 %v619_v59, %v3625_v22  ;;  %v785_v51 = vpop.f32.mrf.mxu2  ;;  %v1584_v59 = vunpack.c.l.b16 %v1524_v39 }
 0x175   : > { %v3816_v4 = vadd.f32 %v1300_v30, %v1067_v50  ;;  %v1863_v50 = vshrl.u32 %v3822_v37, 16 }
 0x176   : > { %1457 = vmatmul.bf16.gmra.mxu1 %v3074_v8  ;;  %2161 = vmatmul.bf16.gmra.mxu0 %v2057_v2  ;;  %v810_v25 = vadd.f32 %v783_v49, %v620_v63 }
 0x177   : > { %1977 = vmatmul.bf16.gmra.mxu3 %v1852_v11  ;;  %v1865_v63 = vrot.slane %v1863_v50, 2  ;;  %v1868_v11 = vrot.slane %v1866_v43, 3 }
 0x179   : > { %1720 = vmatmul.bf16.gmra.mxu2 %v1613_v42  ;;  %v1761_v42 = vld [vmem:[%s3465_s8 + $0x60] sm:$0x7]  ;;  %v1869_v54 = vor.u32 %v1868_v11, %v1865_v63 }
 0x17a   : > { %v1041_v1 = vpop.f32.mrf.mxu3 }
 0x17b   : > { %v1068_v24 = vadd.f32 %v1041_v1, %v810_v25  ;;  %v621_v22 = vpop.f32.mrf.mxu1  ;;  %v1305_v10 = vpop.f32.mrf.mxu0  ;;  %v1779_v1 = vunpack.c.l.b16 %v1761_v42  ;;  %v1870_v0 = vsel %vm1781_vm5, %v1860_v26, %v1869_v54  ;;  %v3855_v26 = vld [vmem:[%s3956_s2] ss:$0 sm:$0xff] }
 0x17c   : > { %v622_v55 = vadd.f32 %v621_v22, %v3635_v31  ;;  %v788_v18 = vpop.f32.mrf.mxu2  ;;  %v3075_v31 = vld [vmem:[%s3465_s8 + $0x40] sm:$0xff]  }
 0x17d   : > { %v3824_v21 = vadd.f32 %v1303_v3, %v1068_v24 }
 0x17e   : > { %v811_v46 = vadd.f32 %v785_v51, %v622_v55 }
 0x182   : > { %v1043_v34 = vpop.f32.mrf.mxu3 }
 0x183   : > { %v1069_v36 = vadd.f32 %v1043_v34, %v811_v46  ;;  %v624_v19 = vpop.f32.mrf.mxu1  ;;  %v1308_v44 = vpop.f32.mrf.mxu0 }
 0x184   : > { %v625_v30 = vadd.f32 %v624_v19, %v3652_v41  ;;  %v790_v49 = vpop.f32.mrf.mxu2  ;;  %v1583_v41 = vunpack.c.l.b16 %v1523_v5 }
 0x185   : > { %v3833_v33 = vadd.f32 %v1305_v10, %v1069_v36 }
 0x186   : > { %1462 = vmatmul.bf16.gmra.mxu1 %v3075_v31  ;;  %2166 = vmatmul.bf16.gmra.mxu0 %v2059_v57  ;;  %v812_v15 = vadd.f32 %v788_v18, %v625_v30  ;;  %v1595_v51 = vpack.c.b16 %v1584_v59, %v1583_v41  ;;  %v3076_v18 = vld [vmem:[%s3465_s8 + $0x48] sm:$0xff]   ;;  %v3846_v34 = vpack.c.b16 %v1779_v1, %v1583_v41 }
 0x187   : > { %1982 = vmatmul.bf16.gmra.mxu3 %v1861_v32 }
 0x188   : > { %v1616_v24 = vrot.slane %v1595_v51, 2  ;;  %v1872_v37 = vshrl.u32 %v3846_v34, 16  ;;  %v2062_v39 = vrot.slane %v3846_v34, 3 }
 0x189   : > { %1725 = vmatmul.bf16.gmra.mxu2 %v1615_v12 }
 0x18a   : > { %v1046_v16 = vpop.f32.mrf.mxu3  ;;  %v1617_v19 = vsel %vm1596_vm4, %v1614_v28, %v1616_v24  ;;  %v1874_v28 = vrot.slane %v1872_v37, 2  ;;  %v1359_v37 = vpack.c.b16 %v3663_v52, %v3663_v52 }
 0x18b   : > { %v1070_v3 = vadd.f32 %v1046_v16, %v812_v15  ;;  %v626_v60 = vpop.f32.mrf.mxu1  ;;  %v1310_v8 = vpop.f32.mrf.mxu0 }
 0x18c   : > { %v1686_v2 = vpop.f32.mrf.mxu2  ;;  %v2063_v8 = vsel %vm906_vm3, %v2060_v53, %v2062_v39 }
 0x18d   : > { %v3840_v25 = vadd.f32 %v1308_v44, %v1070_v3  ;;  %v1875_v44 = vshll.u32 %v3846_v34, 16 }
 0x18f   : > { %v1877_v49 = vrot.slane %v1875_v44, 3 }
 0x191   : > { %v1878_v50 = vor.u32 %v1877_v49, %v1874_v28 }
 0x192   : > { %v1048_v22 = vpop.f32.mrf.mxu3 }
 0x193   : > { %v1428_v10 = vpop.f32.mrf.mxu1  ;;  %v2132_v55 = vpop.f32.mrf.mxu0 }
 0x194   : > { %v1688_v46 = vpop.f32.mrf.mxu2  ;;  %v1482_v36 = vadd.f32 %v1428_v10, %v3675_v7 }
 0x196   : > { %1467 = vmatmul.bf16.gmra.mxu1 %v3076_v18  ;;  %2171 = vmatmul.bf16.gmra.mxu0 %v2061_v20  ;;  %v1740_v31 = vadd.f32 %v1686_v2, %v1482_v36  ;;  %v1879_v2 = vsel %vm1781_vm5, %v1869_v54, %v1878_v50 }
 0x197   : > { %1987 = vmatmul.bf16.gmra.mxu3 %v1870_v0 }
 0x199   : > { %1730 = vmatmul.bf16.gmra.mxu2 %v1617_v19 }
 0x19a   : > { %v1948_v57 = vpop.f32.mrf.mxu3 }
 0x19b   : > { %v2002_v23 = vadd.f32 %v1948_v57, %v1740_v31  ;;  %v1430_v30 = vpop.f32.mrf.mxu1  ;;  %v2134_v7 = vpop.f32.mrf.mxu0 }
 0x19c   : > { %v1691_v32 = vpop.f32.mrf.mxu2  ;;  %v1483_v15 = vadd.f32 %v1430_v30, %v3680_v61 }
 0x19d   : > { %v2186_v12 = vadd.f32 %v2132_v55, %v2002_v23 }
 0x19e   : > { %v1741_v41 = vadd.f32 %v1688_v46, %v1483_v15 }
 0x19f   : > { %v2211_v5 = vadd.f32 %v3855_v26, %v2186_v12 }
 0x1a1   : > { %v2253_v43 = vmin.f32 %v2211_v5, 0.0  ;;  %vm2232_vm6 = vcmp.gt.f32.partialorder %v2211_v5, 0.0 }
 0x1a2   : > { %v1950_v59 = vpop.f32.mrf.mxu3 }
 0x1a3   : > { %v2003_v16 = vadd.f32 %v1950_v59, %v1741_v41  ;;  %v1433_v3 = vpop.f32.mrf.mxu1  ;;  %v2137_v60 = vpop.f32.mrf.mxu0  ;;  %v2274_v11 = vmul.f32 1.442695, %v2253_v43 }
 0x1a4   : > { %v1693_v63 = vpop.f32.mrf.mxu2  ;;  %v1484_v61 = vadd.f32 %v1433_v3, %v3689_v14 }
 0x1a5   : > { %v2187_v51 = vadd.f32 %v2134_v7, %v2003_v16  ;;  %3237 = vpow2.f32 %v2274_v11 }
 0x1a6   : > { %1472 = vmatmul.bf16.gmra.mxu1 %v3659_v45  ;;  %2176 = vmatmul.bf16.gmra.mxu0 %v2063_v8  ;;  %v1742_v22 = vadd.f32 %v1691_v32, %v1484_v61 }
 0x1a7   : > { %v2212_v42 = vadd.f32 %v3855_v26, %v2187_v51  ;;  %1992 = vmatmul.bf16.gmra.mxu3 %v1879_v2 }
 0x1a9   : > { %1735 = vmatmul.bf16.gmra.mxu2 %v1616_v24  ;;  %v2254_v1 = vmin.f32 %v2212_v42, 0.0  ;;  %vm2233_vm7 = vcmp.gt.f32.partialorder %v2212_v42, 0.0 }
 0x1aa   : > { %v1953_v53 = vpop.f32.mrf.mxu3 }
 0x1ab   : > { %v2276_v10 = vmul.f32 1.442695, %v2254_v1  ;;  %v2004_v54 = vadd.f32 %v1953_v53, %v1742_v22  ;;  %v1435_v55 = vpop.f32.mrf.mxu1  ;;  %v2139_v18 = vpop.f32.mrf.mxu0 }
 0x1ac   : > { %v1696_v20 = vpop.f32.mrf.mxu2  ;;  %v1485_v45 = vadd.f32 %v1435_v55, %v3697_v29  ;;  %v3238_v0 = vpop.eup %3237 }
 0x1ad   : > { %3239 = vpow2.f32 %v2276_v10  ;;  %v2188_v14 = vadd.f32 %v2137_v60, %v2004_v54  ;;  %v2857_v36 = vadd.f32 -1.0, %v3238_v0 }
 0x1ae   : > { %v1743_v24 = vadd.f32 %v1693_v63, %v1485_v45 }
 0x1af   : > { %v2213_v46 = vadd.f32 %v3855_v26, %v2188_v14  ;;  %v2337_v49 = vsel %vm2232_vm6, %v2211_v5, %v2857_v36 }
 0x1b1   : > { %v2255_v34 = vmin.f32 %v2213_v46, 0.0  ;;  %vm2234_vm8 = vcmp.gt.f32.partialorder %v2213_v46, 0.0 }
 0x1b2   : > { %v1955_v19 = vpop.f32.mrf.mxu3 }
 0x1b3   : > { %v3240_v44 = vpop.eup %3239  ;;  %v2005_v31 = vadd.f32 %v1955_v19, %v1743_v24  ;;  %v1438_v57 = vpop.f32.mrf.mxu1  ;;  %v2278_v7 = vmul.f32 1.442695, %v2255_v34 }
 0x1b4   : > { %v2142_v23 = vpop.f32.mrf.mxu0  ;;  %v2858_v30 = vadd.f32 -1.0, %v3240_v44  ;;  %v1698_v29 = vpop.f32.mrf.mxu2  ;;  %v1486_v28 = vadd.f32 %v1438_v57, %v3705_v62 }
 0x1b5   : > { %v2189_v32 = vadd.f32 %v2139_v18, %v2005_v31  ;;  %3241 = vpow2.f32 %v2278_v7 }
 0x1b6   : > { %v2338_v12 = vsel %vm2233_vm7, %v2212_v42, %v2858_v30  ;;  %1477 = vmatmul.bf16.gmra.mxu1 %v1359_v37  ;;  %2181 = vmatmul.bf16.gmra.mxu0 %v2062_v39  ;;  %v1744_v41 = vadd.f32 %v1696_v20, %v1486_v28 }
 0x1b7   : > { %v3018_v15 = vpack.c.bf16 %v2338_v12, %v2337_v49  ;;  %v2214_v43 = vadd.f32 %v3855_v26, %v2189_v32  ;;  %1997 = vmatmul.bf16.gmra.mxu3 %v1878_v50 }
 0x1b9   : > { %3019 = vst [vmem:[%s3874_s19] sm:$0xff] %v3018_v15   ;;  %v2256_v52 = vmin.f32 %v2214_v43, 0.0  ;;  %vm2235_vm9 = vcmp.gt.f32.partialorder %v2214_v43, 0.0 }
 0x1ba   : > { %v1958_v59 = vpop.f32.mrf.mxu3 }
 0x1bb   : > { %v2280_v16 = vmul.f32 1.442695, %v2256_v52  ;;  %v2006_v3 = vadd.f32 %v1958_v59, %v1744_v41  ;;  %v1440_v60 = vpop.f32.mrf.mxu1  ;;  %v3242_v2 = vpop.eup %3241 }
 0x1bc   : > { %v2144_v62 = vpop.f32.mrf.mxu0  ;;  %v1701_v5 = vpop.f32.mrf.mxu2  ;;  %v1487_v39 = vadd.f32 %v1440_v60, %v3714_v13  ;;  %v2859_v51 = vadd.f32 -1.0, %v3242_v2 }
 0x1bd   : > { %3243 = vpow2.f32 %v2280_v16  ;;  %v2190_v8 = vadd.f32 %v2142_v23, %v2006_v3 }
 0x1be   : > { %v1745_v11 = vadd.f32 %v1698_v29, %v1487_v39  ;;  %v2339_v20 = vsel %vm2234_vm8, %v2213_v46, %v2859_v51 }
 0x1bf   : > { %v2215_v50 = vadd.f32 %v3855_v26, %v2190_v8 }
 0x1c1   : > { %v2257_v63 = vmin.f32 %v2215_v50, 0.0  ;;  %vm2236_vm10 = vcmp.gt.f32.partialorder %v2215_v50, 0.0 }
 0x1c2   : > { %v1960_v61 = vpop.f32.mrf.mxu3 }
 0x1c3   : > { %v3244_v42 = vpop.eup %3243  ;;  %v2007_v1 = vadd.f32 %v1960_v61, %v1745_v11  ;;  %v1443_v22 = vpop.f32.mrf.mxu1  ;;  %v2282_v55 = vmul.f32 1.442695, %v2257_v63 }
 0x1c4   : > { %v2147_v53 = vpop.f32.mrf.mxu0  ;;  %v2860_v10 = vadd.f32 -1.0, %v3244_v42  ;;  %v1703_v54 = vpop.f32.mrf.mxu2  ;;  %v1488_v13 = vadd.f32 %v1443_v22, %v3722_v35 }
 0x1c5   : > { %v2191_v18 = vadd.f32 %v2144_v62, %v2007_v1  ;;  %3245 = vpow2.f32 %v2282_v55 }
 0x1c6   : > { %v2340_v14 = vsel %vm2235_vm9, %v2214_v43, %v2860_v10  ;;  %v1746_v24 = vadd.f32 %v1701_v5, %v1488_v13 }
 0x1c7   : > { %v3023_v45 = vpack.c.bf16 %v2340_v14, %v2339_v20  ;;  %v2216_v0 = vadd.f32 %v3855_v26, %v2191_v18 }
 0x1c9   : > { %3078 = vst [vmem:[%s3874_s19 + $0x8] sm:$0xff] %v3023_v45   ;;  %v2258_v34 = vmin.f32 %v2216_v0, 0.0  ;;  %vm2237_vm11 = vcmp.gt.f32.partialorder %v2216_v0, 0.0 }
 0x1ca   : > { %v1963_v36 = vpop.f32.mrf.mxu3 }
 0x1cb   : > { %v2284_v19 = vmul.f32 1.442695, %v2258_v34  ;;  %v2008_v37 = vadd.f32 %v1963_v36, %v1746_v24  ;;  %v1445_v44 = vpop.f32.mrf.mxu1  ;;  %v3246_v35 = vpop.eup %3245 }
 0x1cc   : > { %v2149_v31 = vpop.f32.mrf.mxu0  ;;  %v1706_v57 = vpop.f32.mrf.mxu2  ;;  %v1489_v30 = vadd.f32 %v1445_v44, %v3731_v56  ;;  %v2861_v32 = vadd.f32 -1.0, %v3246_v35 }
 0x1cd   : > { %3247 = vpow2.f32 %v2284_v19  ;;  %v2192_v23 = vadd.f32 %v2147_v53, %v2008_v37 }
 0x1ce   : > { %v1747_v7 = vadd.f32 %v1703_v54, %v1489_v30  ;;  %v2341_v3 = vsel %vm2236_vm10, %v2215_v50, %v2861_v32 }
 0x1cf   : > { %v2217_v46 = vadd.f32 %v3855_v26, %v2192_v23 }
 0x1d1   : > { %v2259_v29 = vmin.f32 %v2217_v46, 0.0  ;;  %vm2238_vm12 = vcmp.gt.f32.partialorder %v2217_v46, 0.0 }
 0x1d2   : > { %v1965_v28 = vpop.f32.mrf.mxu3 }
 0x1d3   : > { %v3248_v49 = vpop.eup %3247  ;;  %v2009_v12 = vadd.f32 %v1965_v28, %v1747_v7  ;;  %v1448_v15 = vpop.f32.mrf.mxu1  ;;  %v2286_v59 = vmul.f32 1.442695, %v2259_v29 }
 0x1d4   : > { %v2152_v43 = vpop.f32.mrf.mxu0  ;;  %v2862_v52 = vadd.f32 -1.0, %v3248_v49  ;;  %v1708_v41 = vpop.f32.mrf.mxu2  ;;  %v1490_v56 = vadd.f32 %v1448_v15, %v3739_v58 }
 0x1d5   : > { %v2193_v16 = vadd.f32 %v2149_v31, %v2009_v12  ;;  %3249 = vpow2.f32 %v2286_v59 }
 0x1d6   : > { %v2342_v60 = vsel %vm2237_vm11, %v2216_v0, %v2862_v52  ;;  %v1748_v39 = vadd.f32 %v1706_v57, %v1490_v56 }
 0x1d7   : > { %v3028_v62 = vpack.c.bf16 %v2342_v60, %v2341_v3  ;;  %v2218_v5 = vadd.f32 %v3855_v26, %v2193_v16 }
 0x1d9   : > { %3079 = vst [vmem:[%s3874_s19 + $0x10] sm:$0xff] %v3028_v62   ;;  %v2260_v8 = vmin.f32 %v2218_v5, 0.0  ;;  %vm2239_vm13 = vcmp.gt.f32.partialorder %v2218_v5, 0.0 }
 0x1da   : > { %v1968_v2 = vpop.f32.mrf.mxu3 }
 0x1db   : > { %v2288_v63 = vmul.f32 1.442695, %v2260_v8  ;;  %v2010_v11 = vadd.f32 %v1968_v2, %v1748_v39  ;;  %v1450_v51 = vpop.f32.mrf.mxu1  ;;  %v3250_v58 = vpop.eup %3249 }
 0x1dc   : > { %v2154_v61 = vpop.f32.mrf.mxu0  ;;  %v1711_v42 = vpop.f32.mrf.mxu2  ;;  %v1491_v22 = vadd.f32 %v1450_v51, %v3748_v6  ;;  %v2863_v54 = vadd.f32 -1.0, %v3250_v58 }
 0x1dd   : > { %3251 = vpow2.f32 %v2288_v63  ;;  %v2194_v1 = vadd.f32 %v2152_v43, %v2010_v11 }
 0x1de   : > { %v1749_v10 = vadd.f32 %v1708_v41, %v1491_v22  ;;  %v2343_v36 = vsel %vm2238_vm12, %v2217_v46, %v2863_v54 }
 0x1df   : > { %v2219_v50 = vadd.f32 %v3855_v26, %v2194_v1 }
 0x1e1   : > { %v2261_v53 = vmin.f32 %v2219_v50, 0.0  ;;  %vm2240_vm14 = vcmp.gt.f32.partialorder %v2219_v50, 0.0 }
 0x1e2   : > { %v1970_v55 = vpop.f32.mrf.mxu3 }
 0x1e3   : > { %v3252_v18 = vpop.eup %3251  ;;  %v2011_v13 = vadd.f32 %v1970_v55, %v1749_v10  ;;  %v1453_v20 = vpop.f32.mrf.mxu1  ;;  %v2290_v34 = vmul.f32 1.442695, %v2261_v53 }
 0x1e4   : > { %v2157_v14 = vpop.f32.mrf.mxu0  ;;  %v2864_v45 = vadd.f32 -1.0, %v3252_v18  ;;  %v1713_v0 = vpop.f32.mrf.mxu2  ;;  %v1492_v6 = vadd.f32 %v1453_v20, %v3756_v48 }
 0x1e5   : > { %v2195_v24 = vadd.f32 %v2154_v61, %v2011_v13  ;;  %3253 = vpow2.f32 %v2290_v34 }
 0x1e6   : > { %v2344_v19 = vsel %vm2239_vm13, %v2218_v5, %v2864_v45  ;;  %v1750_v57 = vadd.f32 %v1711_v42, %v1492_v6 }
 0x1e7   : > { %v3033_v37 = vpack.c.bf16 %v2344_v19, %v2343_v36  ;;  %v2220_v44 = vadd.f32 %v3855_v26, %v2195_v24 }
 0x1e9   : > { %3080 = vst [vmem:[%s3874_s19 + $0x18] sm:$0xff] %v3033_v37   ;;  %v2262_v31 = vmin.f32 %v2220_v44, 0.0  ;;  %vm2241_vm15 = vcmp.gt.f32.partialorder %v2220_v44, 0.0 }
 0x1ea   : > { %v1973_v23 = vpop.f32.mrf.mxu3 }
 0x1eb   : > { %v2292_v30 = vmul.f32 1.442695, %v2262_v31  ;;  %v2012_v35 = vadd.f32 %v1973_v23, %v1750_v57  ;;  %v1455_v29 = vpop.f32.mrf.mxu1  ;;  %v3254_v48 = vpop.eup %3253 }
 0x1ec   : > { %v2159_v7 = vpop.f32.mrf.mxu0  ;;  %v1716_v32 = vpop.f32.mrf.mxu2  ;;  %v1493_v49 = vadd.f32 %v1455_v29, %v3765_v17  ;;  %v2865_v43 = vadd.f32 -1.0, %v3254_v48 }
 0x1ed   : > { %3255 = vpow2.f32 %v2292_v30  ;;  %v2196_v28 = vadd.f32 %v2157_v14, %v2012_v35 }
 0x1ee   : > { %v1751_v15 = vadd.f32 %v1713_v0, %v1493_v49  ;;  %v2345_v8 = vsel %vm2240_vm14, %v2219_v50, %v2865_v43 }
 0x1ef   : > { %v2221_v46 = vadd.f32 %v3855_v26, %v2196_v28 }
 0x1f1   : > { %v2263_v12 = vmin.f32 %v2221_v46, 0.0  ;;  %vm2242_vm0 = vcmp.gt.f32.partialorder %v2221_v46, 0.0 }
 0x1f2   : > { %v1975_v52 = vpop.f32.mrf.mxu3 }
 0x1f3   : > { %v3256_v41 = vpop.eup %3255  ;;  %v2013_v59 = vadd.f32 %v1975_v52, %v1751_v15  ;;  %v1458_v16 = vpop.f32.mrf.mxu1  ;;  %v2294_v62 = vmul.f32 1.442695, %v2263_v12 }
 0x1f4   : > { %v2162_v56 = vpop.f32.mrf.mxu0  ;;  %v2866_v3 = vadd.f32 -1.0, %v3256_v41  ;;  %v1718_v60 = vpop.f32.mrf.mxu2  ;;  %v1494_v17 = vadd.f32 %v1458_v16, %v3773_v27 }
 0x1f5   : > { %v2197_v5 = vadd.f32 %v2159_v7, %v2013_v59  ;;  %3257 = vpow2.f32 %v2294_v62 }
 0x1f6   : > { %v2346_v39 = vsel %vm2241_vm15, %v2220_v44, %v2866_v3  ;;  %v1752_v51 = vadd.f32 %v1716_v32, %v1494_v17 }
 0x1f7   : > { %v3038_v2 = vpack.c.bf16 %v2346_v39, %v2345_v8  ;;  %v2222_v63 = vadd.f32 %v3855_v26, %v2197_v5 }
 0x1f9   : > { %3081 = vst [vmem:[%s3874_s19 + $0x20] sm:$0xff] %v3038_v2   ;;  %v2264_v11 = vmin.f32 %v2222_v63, 0.0  ;;  %vm2243_vm1 = vcmp.gt.f32.partialorder %v2222_v63, 0.0 }
 0x1fa   : > { %v1978_v61 = vpop.f32.mrf.mxu3 }
 0x1fb   : > { %v2296_v42 = vmul.f32 1.442695, %v2264_v11  ;;  %v2014_v1 = vadd.f32 %v1978_v61, %v1752_v51  ;;  %v1460_v22 = vpop.f32.mrf.mxu1  ;;  %v3258_v27 = vpop.eup %3257 }
 0x1fc   : > { %v2164_v58 = vpop.f32.mrf.mxu0  ;;  %v1721_v53 = vpop.f32.mrf.mxu2  ;;  %v1495_v54 = vadd.f32 %v1460_v22, %v3782_v38  ;;  %v2867_v13 = vadd.f32 -1.0, %v3258_v27 }
 0x1fd   : > { %3259 = vpow2.f32 %v2296_v42  ;;  %v2198_v10 = vadd.f32 %v2162_v56, %v2014_v1 }
 0x1fe   : > { %v1753_v18 = vadd.f32 %v1718_v60, %v1495_v54  ;;  %v2347_v37 = vsel %vm2242_vm0, %v2221_v46, %v2867_v13 }
 0x1ff   : > { %v2223_v50 = vadd.f32 %v3855_v26, %v2198_v10 }
 0x201   : > { %v2265_v55 = vmin.f32 %v2223_v50, 0.0  ;;  %vm2244_vm2 = vcmp.gt.f32.partialorder %v2223_v50, 0.0 }
 0x202   : > { %v1980_v20 = vpop.f32.mrf.mxu3 }
 0x203   : > { %v3260_v14 = vpop.eup %3259  ;;  %v2015_v45 = vadd.f32 %v1980_v20, %v1753_v18  ;;  %v1463_v0 = vpop.f32.mrf.mxu1  ;;  %v2298_v36 = vmul.f32 1.442695, %v2265_v55 }
 0x204   : > { %v2167_v34 = vpop.f32.mrf.mxu0  ;;  %v2868_v24 = vadd.f32 -1.0, %v3260_v14  ;;  %v1723_v6 = vpop.f32.mrf.mxu2  ;;  %v1496_v38 = vadd.f32 %v1463_v0, %v3790_v9 }
 0x205   : > { %v2199_v19 = vadd.f32 %v2164_v58, %v2015_v45  ;;  %3261 = vpow2.f32 %v2298_v36 }
 0x206   : > { %v2348_v44 = vsel %vm2243_vm1, %v2222_v63, %v2868_v24  ;;  %v1754_v30 = vadd.f32 %v1721_v53, %v1496_v38 }
 0x207   : > { %v3043_v31 = vpack.c.bf16 %v2348_v44, %v2347_v37  ;;  %v2224_v57 = vadd.f32 %v3855_v26, %v2199_v19 }
 0x209   : > { %3082 = vst [vmem:[%s3874_s19 + $0x28] sm:$0xff] %v3043_v31   ;;  %v2266_v23 = vmin.f32 %v2224_v57, 0.0  ;;  %vm2245_vm3 = vcmp.gt.f32.partialorder %v2224_v57, 0.0 }
 0x20a   : > { %v1983_v35 = vpop.f32.mrf.mxu3 }
 0x20b   : > { %v2300_v29 = vmul.f32 1.442695, %v2266_v23  ;;  %v2016_v7 = vadd.f32 %v1983_v35, %v1754_v30  ;;  %v1465_v32 = vpop.f32.mrf.mxu1  ;;  %v3262_v9 = vpop.eup %3261 }
 0x20c   : > { %v2169_v28 = vpop.f32.mrf.mxu0  ;;  %v1726_v49 = vpop.f32.mrf.mxu2  ;;  %v1497_v12 = vadd.f32 %v1465_v32, %v3799_v47  ;;  %v2869_v52 = vadd.f32 -1.0, %v3262_v9 }
 0x20d   : > { %3263 = vpow2.f32 %v2300_v29  ;;  %v2200_v48 = vadd.f32 %v2167_v34, %v2016_v7 }
 0x20e   : > { %v1755_v43 = vadd.f32 %v1723_v6, %v1497_v12  ;;  %v2349_v8 = vsel %vm2244_vm2, %v2223_v50, %v2869_v52 }
 0x20f   : > { %v2225_v46 = vadd.f32 %v3855_v26, %v2200_v48 }
 0x211   : > { %v2267_v15 = vmin.f32 %v2225_v46, 0.0  ;;  %vm2246_vm4 = vcmp.gt.f32.partialorder %v2225_v46, 0.0 }
 0x212   : > { %v1985_v41 = vpop.f32.mrf.mxu3 }
 0x213   : > { %v3264_v59 = vpop.eup %3263  ;;  %v2017_v16 = vadd.f32 %v1985_v41, %v1755_v43  ;;  %v1468_v56 = vpop.f32.mrf.mxu1  ;;  %v2302_v5 = vmul.f32 1.442695, %v2267_v15 }
 0x214   : > { %v2172_v3 = vpop.f32.mrf.mxu0  ;;  %v2870_v60 = vadd.f32 -1.0, %v3264_v59  ;;  %v1728_v62 = vpop.f32.mrf.mxu2  ;;  %v1498_v47 = vadd.f32 %v1468_v56, %v3807_v40 }
 0x215   : > { %v2201_v17 = vadd.f32 %v2169_v28, %v2017_v16  ;;  %3265 = vpow2.f32 %v2302_v5 }
 0x216   : > { %v2350_v39 = vsel %vm2245_vm3, %v2224_v57, %v2870_v60  ;;  %v1756_v51 = vadd.f32 %v1726_v49, %v1498_v47 }
 0x217   : > { %v3048_v2 = vpack.c.bf16 %v2350_v39, %v2349_v8  ;;  %v2226_v63 = vadd.f32 %v3855_v26, %v2201_v17 }
 0x219   : > { %3083 = vst [vmem:[%s3874_s19 + $0x30] sm:$0xff] %v3048_v2   ;;  %v2268_v11 = vmin.f32 %v2226_v63, 0.0  ;;  %vm2247_vm5 = vcmp.gt.f32.partialorder %v2226_v63, 0.0 }
 0x21a   : > { %v1988_v61 = vpop.f32.mrf.mxu3 }
 0x21b   : > { %v2304_v42 = vmul.f32 1.442695, %v2268_v11  ;;  %v2018_v1 = vadd.f32 %v1988_v61, %v1756_v51  ;;  %v1470_v22 = vpop.f32.mrf.mxu1  ;;  %v3266_v40 = vpop.eup %3265 }
 0x21c   : > { %v2174_v58 = vpop.f32.mrf.mxu0  ;;  %v1731_v53 = vpop.f32.mrf.mxu2  ;;  %v1499_v54 = vadd.f32 %v1470_v22, %v3816_v4  ;;  %v2871_v18 = vadd.f32 -1.0, %v3266_v40 }
 0x21d   : > { %3267 = vpow2.f32 %v2304_v42  ;;  %v2202_v10 = vadd.f32 %v2172_v3, %v2018_v1 }
 0x21e   : > { %v1757_v55 = vadd.f32 %v1728_v62, %v1499_v54  ;;  %v2351_v19 = vsel %vm2246_vm4, %v2225_v46, %v2871_v18 }
 0x21f   : > { %v2227_v27 = vadd.f32 %v3855_v26, %v2202_v10 }
 0x221   : > { %v2269_v50 = vmin.f32 %v2227_v27, 0.0  ;;  %vm2248_vm6 = vcmp.gt.f32.partialorder %v2227_v27, 0.0 }
 0x222   : > { %v1990_v13 = vpop.f32.mrf.mxu3 }
 0x223   : > { %v3268_v20 = vpop.eup %3267  ;;  %v2019_v14 = vadd.f32 %v1990_v13, %v1757_v55  ;;  %v1473_v45 = vpop.f32.mrf.mxu1  ;;  %v2306_v6 = vmul.f32 1.442695, %v2269_v50 }
 0x224   : > { %v2177_v0 = vpop.f32.mrf.mxu0  ;;  %v2872_v34 = vadd.f32 -1.0, %v3268_v20  ;;  %v1733_v24 = vpop.f32.mrf.mxu2  ;;  %v1500_v4 = vadd.f32 %v1473_v45, %v3824_v21 }
 0x225   : > { %v2203_v36 = vadd.f32 %v2174_v58, %v2019_v14  ;;  %3269 = vpow2.f32 %v2306_v6 }
 0x226   : > { %v2352_v38 = vsel %vm2247_vm5, %v2226_v63, %v2872_v34  ;;  %v1758_v57 = vadd.f32 %v1731_v53, %v1500_v4 }
 0x227   : > { %v3053_v37 = vpack.c.bf16 %v2352_v38, %v2351_v19  ;;  %v2228_v44 = vadd.f32 %v3855_v26, %v2203_v36 }
 0x229   : > { %3084 = vst [vmem:[%s3874_s19 + $0x38] sm:$0xff] %v3053_v37   ;;  %v2270_v31 = vmin.f32 %v2228_v44, 0.0  ;;  %vm2249_vm7 = vcmp.gt.f32.partialorder %v2228_v44, 0.0 }
 0x22a   : > { %v1993_v23 = vpop.f32.mrf.mxu3 }
 0x22b   : > { %v2308_v30 = vmul.f32 1.442695, %v2270_v31  ;;  %v2020_v35 = vadd.f32 %v1993_v23, %v1758_v57  ;;  %v1475_v29 = vpop.f32.mrf.mxu1  ;;  %v3270_v21 = vpop.eup %3269 }
 0x22c   : > { %v2179_v7 = vpop.f32.mrf.mxu0  ;;  %v1736_v32 = vpop.f32.mrf.mxu2  ;;  %v1501_v49 = vadd.f32 %v1475_v29, %v3833_v33  ;;  %v2873_v46 = vadd.f32 -1.0, %v3270_v21 }
 0x22d   : > { %3271 = vpow2.f32 %v2308_v30  ;;  %v2204_v28 = vadd.f32 %v2177_v0, %v2020_v35 }
 0x22e   : > { %v1759_v9 = vadd.f32 %v1733_v24, %v1501_v49  ;;  %v2353_v62 = vsel %vm2248_vm6, %v2227_v27, %v2873_v46 }
 0x22f   : > { %v2229_v48 = vadd.f32 %v3855_v26, %v2204_v28 }
 0x231   : > { %v2271_v12 = vmin.f32 %v2229_v48, 0.0  ;;  %vm2250_vm8 = vcmp.gt.f32.partialorder %v2229_v48, 0.0 }
 0x232   : > { %v1995_v15 = vpop.f32.mrf.mxu3 }
 0x233   : > { %v3272_v43 = vpop.eup %3271  ;;  %v2021_v52 = vadd.f32 %v1995_v15, %v1759_v9  ;;  %v1478_v41 = vpop.f32.mrf.mxu1  ;;  %v2310_v3 = vmul.f32 1.442695, %v2271_v12 }
 0x234   : > { %v2182_v59 = vpop.f32.mrf.mxu0  ;;  %v2874_v16 = vadd.f32 -1.0, %v3272_v43  ;;  %v1738_v56 = vpop.f32.mrf.mxu2  ;;  %v1502_v33 = vadd.f32 %v1478_v41, %v3840_v25 }
 0x235   : > { %v2205_v60 = vadd.f32 %v2179_v7, %v2021_v52  ;;  %3273 = vpow2.f32 %v2310_v3 }
 0x236   : > { %v2354_v5 = vsel %vm2249_vm7, %v2228_v44, %v2874_v16  ;;  %v1760_v39 = vadd.f32 %v1736_v32, %v1502_v33 }
 0x237   : > { %v3058_v17 = vpack.c.bf16 %v2354_v5, %v2353_v62  ;;  %v2230_v47 = vadd.f32 %v3855_v26, %v2205_v60 }
 0x239   : > { %3085 = vst [vmem:[%s3874_s19 + $0x40] sm:$0xff] %v3058_v17   ;;  %v2272_v8 = vmin.f32 %v2230_v47, 0.0  ;;  %vm2251_vm9 = vcmp.gt.f32.partialorder %v2230_v47, 0.0 }
 0x23a   : > { %v1998_v2 = vpop.f32.mrf.mxu3 }
 0x23b   : > { %v2312_v63 = vmul.f32 1.442695, %v2272_v8  ;;  %v2022_v11 = vadd.f32 %v1998_v2, %v1760_v39  ;;  %v1480_v51 = vpop.f32.mrf.mxu1  ;;  %v3274_v1 = vpop.eup %3273 }
 0x23c   : > { %v2184_v61 = vpop.f32.mrf.mxu0  ;;  %v2875_v58 = vadd.f32 -1.0, %v3274_v1 }
 0x23d   : > { %3275 = vpow2.f32 %v2312_v63  ;;  %v2206_v42 = vadd.f32 %v2182_v59, %v2022_v11 }
 0x23e   : > { %v2355_v27 = vsel %vm2250_vm8, %v2229_v48, %v2875_v58 }
 0x23f   : > { %v2231_v25 = vadd.f32 %v3855_v26, %v2206_v42 }
 0x241   : > { %v2273_v22 = vmin.f32 %v2231_v25, 0.0  ;;  %vm2252_vm10 = vcmp.gt.f32.partialorder %v2231_v25, 0.0 }
 0x242   : > { %v2000_v53 = vpop.f32.mrf.mxu3 }
 0x243   : > { %v3276_v10 = vpop.eup %3275  ;;  %v2314_v54 = vmul.f32 1.442695, %v2273_v22 }
 0x244   : > { %v2876_v40 = vadd.f32 -1.0, %v3276_v10 }
 0x245   : > { %3277 = vpow2.f32 %v2314_v54 }
 0x246   : > { %v2356_v50 = vsel %vm2251_vm9, %v2230_v47, %v2876_v40 }
 0x247   : > { %v3063_v55 = vpack.c.bf16 %v2356_v50, %v2355_v27 }
 0x249   : > { %3086 = vst [vmem:[%s3874_s19 + $0x48] sm:$0xff] %v3063_v55  }
 0x24b   : > { %v3278_v26 = vpop.eup %3277 }
 0x24c   : > { %v2877_v18 = vadd.f32 -1.0, %v3278_v26 }
 0x24e   : > { %v2357_v13 = vsel %vm2252_vm10, %v2231_v25, %v2877_v18 }
 0x24f   : > { %v2378_v20 = vpack.c.bf16 %v2357_v13, %v2357_v13 }
 0x251   : > { %2399 = vst [vmem:[%s3874_s19 + $0x50] sm:$0xf] %v2378_v20 }
 0x252   : > { %3336 = shalt.err (!%p3333_p8)
}
 0x253   : > { %s3380_s9 = smov 64   ;;  %s3381_s10 = smov 4  }
 0x254   : > { %3186 = dma.vmem_to_hbm [thread:$0]  (%p3440_p5), %s2414_s27, 1344, %s2416_s28, %s2401_s16, %s3380_s9, %s3380_s9, %s3381_s10  }
 0x255 PF: > { %p3198_p9 = scmp.ge.s32.totalorder %s3375_s15, 2  ;;  %s2430_s11 = sand.u32 1, %s3363_s12  }
 0x256   : > { %s2431_s17 = scalar_lea.sflag [#allocation4], %s2430_s11 }
 0x257   : > { %p3193_p10 = pnand %p3198_p9, %p3444_p6 }
 0x259   : > { %p3194_p11 = pneg %p3193_p10 }
 0x25b   : > { %3358 = dma.done.wait (%p3194_p11), %s2431_s17, 1344  }
 0x25c   : > { %3360 = vsyncadd (%p3194_p11), %s2431_s17, 4294965952  ;;  %p14_p12 = scmp.ge.s32.totalorder %s3427_s18, 4   ;;  %s3960_s12 = smov %s3367_s13 }
 0x25d   : > { %s3961_s13 = smov %s3371_s14  ;;  %s3962_s14 = smov %s3438_s21 }
 0x25e   : > { %s3963_s15 = smov %s3427_s18  ;;  %16 = sbr.rel (!%p14_p12) target bundleno = 4 (0x4), region = 72 }
 0x263   :  { %2437 = vsyncpa [#allocation3], 1 }
 0x264   :  { %2439 = vsyncpa [#allocation3 + $0x1], 1 }
 0x265   :  { %2440 = vsyncpa [#allocation4], 1 }
 0x266   :  { %2442 = vsyncpa [#allocation4 + $0x1], 1 }

</bundles_post_ra>
